<compile_context>
chip_gen: v7x
topology: tpu7x:2x2x1
jax: 0.10.0
libtpu: 0.0.40
codegen_flags: <defaults>
</compile_context>

<pallas_src>
import math
import functools

import jax
import jax.numpy as jnp
from jax.experimental import pallas as pl
from jax.experimental.pallas import tpu as pltpu


# ---------------------------------------------------------------------------
# Fused kernel: one grid step = one batch element.
#   emb_ref  : (1, S, D)  f32   token embeddings for this batch element
#   pe_ref   : (S, D)     f32   sinusoidal positional encoding
#   wA_ref   : (L, D, 3D+D+F)   [W_QKV | W_O | W_1], pre-transposed, compute dtype
#   w2_ref   : (L, F, D)        W_2, pre-transposed, compute dtype
#   vec_ref  : (L+1, 8, padw) f32  packed per-layer vectors + head vectors
#   wout_ref : (D, O)           output projection, compute dtype
#   out_ref  : (1, 1, O)  f32
# ---------------------------------------------------------------------------
def fused_transformer_kernel(emb_ref, pe_ref, wA_ref, w2_ref, vec_ref,
                             wout_ref, out_ref, *, n_heads):
    S, D = pe_ref.shape
    n_layers, F, _ = w2_ref.shape
    O = out_ref.shape[-1]
    H = n_heads
    d_k = D // H
    scale = 1.0 / math.sqrt(float(d_k))
    cdt = wA_ref.dtype                      # matmul compute dtype (bf16 default)

    def layernorm(y, g, b):                 # f32, eps matches nn.LayerNorm
        mu = jnp.mean(y, axis=-1, keepdims=True)
        var = jnp.mean((y - mu) ** 2, axis=-1, keepdims=True)
        return (y - mu) * jax.lax.rsqrt(var + 1e-5) * g + b

    def matmul(a, w):                       # cast activation only; f32 accumulate
        return jnp.dot(a.astype(cdt), w, preferred_element_type=jnp.float32)

    # embedding scale + positional encoding (dropout = identity, eval mode)
    x = emb_ref[0] * math.sqrt(float(D)) + pe_ref[...]            # (S, D) f32

    for l in range(n_layers):
        wA = wA_ref[l]                                            # (D, 3D+D+F)
        vec = vec_ref[l]                                          # (8, padw) f32
        bqkv = vec[0, :3 * D]
        bo, ln1g, ln1b = vec[1, :D], vec[2, :D], vec[3, :D]
        b1 = vec[4, :F]
        b2, ln2g, ln2b = vec[5, :D], vec[6, :D], vec[7, :D]

        # ---- multi-head self-attention (heads = batched einsum axis) -------
        qkv = matmul(x, wA[:, :3 * D]) + bqkv                     # (S, 3D) f32
        q = qkv[:, :D].reshape(S, H, d_k)
        k = qkv[:, D:2 * D].reshape(S, H, d_k)
        v = qkv[:, 2 * D:3 * D].reshape(S, H, d_k)
        s = jnp.einsum('qhd,khd->hqk', q.astype(cdt), k.astype(cdt),
                       preferred_element_type=jnp.float32) * scale
        s = s - jnp.max(s, axis=-1, keepdims=True)                # stable softmax (f32)
        p = jnp.exp(s)
        p = p * pl.reciprocal(jnp.sum(p, axis=-1, keepdims=True), approx=True)
        a = jnp.einsum('hqk,khd->qhd', p.astype(cdt), v.astype(cdt),
                       preferred_element_type=jnp.float32)        # (S, H, d_k)
        attn = matmul(a.reshape(S, D), wA[:, 3 * D:4 * D]) + bo   # combine heads + W_O

        # residual + LayerNorm1 (dropout1 = identity)
        x = layernorm(x + attn, ln1g, ln1b)

        # ---- feed-forward ---------------------------------------------------
        h1 = jnp.maximum(matmul(x, wA[:, 4 * D:4 * D + F]) + b1, 0.0)
        ff = matmul(h1, w2_ref[l]) + b2

        # residual + LayerNorm2 (dropout2 = identity)
        x = layernorm(x + ff, ln2g, ln2b)

    # ---- output head: final LayerNorm on CLS token, then projection --------
    # (LayerNorm is per-position, so LN(x)[0] == LN(x[0]).)
    head = vec_ref[n_layers]
    xn = layernorm(x[0:1, :], head[0, :D], head[1, :D])           # (1, D)
    out_ref[0] = matmul(xn, wout_ref[...]) + head[2, :O]


# ---------------------------------------------------------------------------
# Pack the PyTorch-layout parameters into the kernel's 4 packed weight arrays.
# ---------------------------------------------------------------------------
def pack_for_kernel(params, compute_dtype=jnp.bfloat16):
    D = params['wqkv'].shape[1]
    F = params['w1'].shape[2]
    O = params['w_out'].shape[1]
    padw = max(3 * D, D, F, O)
    padw = ((padw + 127) // 128) * 128

    def padlane(v):
        pad = [(0, 0)] * (v.ndim - 1) + [(0, padw - v.shape[-1])]
        return jnp.pad(v, pad)

    # per-layer matrices packed on the lane axis: [W_QKV | W_O | W_1]
    wA = jnp.concatenate([params['wqkv'], params['wo'], params['w1']], axis=2)
    w2 = params['w2']

    # per-layer vectors -> (L, 8, padw)
    rows = [params['bqkv'][:, 0, :], params['bo'][:, 0, :],
            params['ln1_g'][:, 0, :], params['ln1_b'][:, 0, :],
            params['b1'][:, 0, :], params['b2'][:, 0, :],
            params['ln2_g'][:, 0, :], params['ln2_b'][:, 0, :]]
    vec_layers = jnp.stack([padlane(r) for r in rows], axis=1)

    # head vectors (final LN gain/shift, output bias) -> extra "layer" slot
    zeros = jnp.zeros((padw,), jnp.float32)
    head_rows = [padlane(params['ln_g'][0]), padlane(params['ln_b'][0]),
                 padlane(params['b_out'][0])] + [zeros] * 5
    vec_head = jnp.stack(head_rows, axis=0)[None]                 # (1, 8, padw)
    vecs = jnp.concatenate([vec_layers, vec_head], axis=0)        # (L+1, 8, padw)

    return dict(wA=wA.astype(compute_dtype), w2=w2.astype(compute_dtype),
                vecs=vecs, wout=params['w_out'].astype(compute_dtype))


def transformer_forward(tokens, params, n_heads, compute_dtype=jnp.bfloat16):
    # Embedding table gather stays in plain JAX (XLA gather); everything
    # downstream runs in one pallas_call.
    # TODO(synk): at larger B*S, fuse the gather via PrefetchScalarGridSpec +
    # pl.Element row-gather on the embedding table instead of jnp.take.
    emb = jnp.take(params['embedding'], tokens, axis=0)           # (B, S, D)
    B, S, D = emb.shape
    O = params['w_out'].shape[1]
    packed = pack_for_kernel(params, compute_dtype)
    wA, w2, vecs, wout = packed['wA'], packed['w2'], packed['vecs'], packed['wout']
    pe = params['pe'][:S]

    kernel = functools.partial(fused_transformer_kernel, n_heads=n_heads)
    out = pl.pallas_call(
        kernel,
        out_shape=jax.ShapeDtypeStruct((B, 1, O), jnp.float32),
        grid=(B,),
        in_specs=[
            pl.BlockSpec((1, S, D), lambda b: (b, 0, 0)),          # per-batch activations
            pl.BlockSpec((S, D), lambda b: (0, 0)),                # positional encoding
            pl.BlockSpec(wA.shape, lambda b: (0, 0, 0)),           # [W_QKV|W_O|W_1] stack
            pl.BlockSpec(w2.shape, lambda b: (0, 0, 0)),           # W_2 stack
            pl.BlockSpec(vecs.shape, lambda b: (0, 0, 0)),         # packed vectors
            pl.BlockSpec(wout.shape, lambda b: (0, 0)),            # output projection
        ],
        out_specs=pl.BlockSpec((1, 1, O), lambda b: (b, 0, 0)),
        compiler_params=pltpu.CompilerParams(
            dimension_semantics=("parallel",)),                    # megacore on v7x
    )(emb, pe, wA, w2, vecs, wout)
    return out.reshape(B, O)


# ---------------------------------------------------------------------------
# Parameter init (deterministic, synthetic), matching nn.Linear / nn.LayerNorm /
# nn.Embedding defaults and the sinusoidal PositionalEncoding buffer.
# Linear weights are stored pre-transposed as (d_in, d_out).
# ---------------------------------------------------------------------------
def _init_linear(key, d_in, d_out):
    k1, k2 = jax.random.split(key)
    bound = 1.0 / math.sqrt(d_in)
    w = jax.random.uniform(k1, (d_in, d_out), jnp.float32, -bound, bound)
    b = jax.random.uniform(k2, (1, d_out), jnp.float32, -bound, bound)
    return w, b


def init_params(key, input_size, output_size, d_model, d_ff, n_layers, max_len):
    keys = jax.random.split(key, 2 + n_layers)
    params = {}
    params['embedding'] = jax.random.normal(keys[0], (input_size, d_model), jnp.float32)

    # sinusoidal positional encoding (as in PositionalEncoding)
    position = jnp.arange(max_len, dtype=jnp.float32)[:, None]
    div_term = jnp.exp(jnp.arange(0, d_model, 2, dtype=jnp.float32)
                       * (-math.log(10000.0) / d_model))
    pe = jnp.zeros((max_len, d_model), jnp.float32)
    pe = pe.at[:, 0::2].set(jnp.sin(position * div_term))
    pe = pe.at[:, 1::2].set(jnp.cos(position * div_term))
    params['pe'] = pe

    keys_layer = ('wqkv', 'bqkv', 'wo', 'bo', 'ln1_g', 'ln1_b',
                  'w1', 'b1', 'w2', 'b2', 'ln2_g', 'ln2_b')
    per_layer = {k: [] for k in keys_layer}
    for i in range(n_layers):
        lk = jax.random.split(keys[1 + i], 6)
        wq, bq = _init_linear(lk[0], d_model, d_model)
        wk, bk = _init_linear(lk[1], d_model, d_model)
        wv, bv = _init_linear(lk[2], d_model, d_model)
        wo, bo = _init_linear(lk[3], d_model, d_model)
        w1, b1 = _init_linear(lk[4], d_model, d_ff)
        w2, b2 = _init_linear(lk[5], d_ff, d_model)
        per_layer['wqkv'].append(jnp.concatenate([wq, wk, wv], axis=1))  # (D, 3D)
        per_layer['bqkv'].append(jnp.concatenate([bq, bk, bv], axis=1))  # (1, 3D)
        per_layer['wo'].append(wo)
        per_layer['bo'].append(bo)
        per_layer['ln1_g'].append(jnp.ones((1, d_model), jnp.float32))
        per_layer['ln1_b'].append(jnp.zeros((1, d_model), jnp.float32))
        per_layer['w1'].append(w1)
        per_layer['b1'].append(b1)
        per_layer['w2'].append(w2)
        per_layer['b2'].append(b2)
        per_layer['ln2_g'].append(jnp.ones((1, d_model), jnp.float32))
        per_layer['ln2_b'].append(jnp.zeros((1, d_model), jnp.float32))
    for k, v in per_layer.items():
        params[k] = jnp.stack(v, axis=0)           # leading L axis

    params['ln_g'] = jnp.ones((1, d_model), jnp.float32)
    params['ln_b'] = jnp.zeros((1, d_model), jnp.float32)
    params['w_out'], params['b_out'] = _init_linear(keys[-1], d_model, output_size)
    return params


# ---------------------------------------------------------------------------
# Pure-JAX reference (mirrors the PyTorch module, eval mode, mask=None)
# ---------------------------------------------------------------------------
def _ln_ref(y, g, b):
    mu = jnp.mean(y, axis=-1, keepdims=True)
    var = jnp.mean((y - mu) ** 2, axis=-1, keepdims=True)
    return (y - mu) * jax.lax.rsqrt(var + 1e-5) * g + b


def transformer_reference(tokens, params, n_heads):
    emb = jnp.take(params['embedding'], tokens, axis=0)
    B, S, D = emb.shape
    d_k = D // n_heads
    x = emb * math.sqrt(float(D)) + params['pe'][None, :S, :]
    n_layers = params['wqkv'].shape[0]
    for l in range(n_layers):
        qkv = x @ params['wqkv'][l] + params['bqkv'][l]
        q, k, v = qkv[..., :D], qkv[..., D:2 * D], qkv[..., 2 * D:]
        split = lambda t: t.reshape(B, S, n_heads, d_k).transpose(0, 2, 1, 3)
        q, k, v = split(q), split(k), split(v)
        s = jnp.einsum('bhqd,bhkd->bhqk', q, k) / math.sqrt(float(d_k))
        p = jax.nn.softmax(s, axis=-1)
        a = jnp.einsum('bhqk,bhkd->bhqd', p, v)
        a = a.transpose(0, 2, 1, 3).reshape(B, S, D)
        a = a @ params['wo'][l] + params['bo'][l]
        x = _ln_ref(x + a, params['ln1_g'][l], params['ln1_b'][l])
        h = jax.nn.relu(x @ params['w1'][l] + params['b1'][l])
        ff = h @ params['w2'][l] + params['b2'][l]
        x = _ln_ref(x + ff, params['ln2_g'][l], params['ln2_b'][l])
    x = _ln_ref(x, params['ln_g'], params['ln_b'])
    return x[:, 0, :] @ params['w_out'] + params['b_out']


if __name__ == "__main__":
    input_size = 16     # vocab size
    output_size = 8
    d_model = 32
    n_heads = 4
    d_ff = 64
    n_layers = 2
    B, S = 2, 8

    root = jax.random.PRNGKey(0)
    kp, kt = jax.random.split(root)
    params = init_params(kp, input_size, output_size, d_model, d_ff, n_layers, max_len=S)
    tokens = jax.random.randint(kt, (B, S), 0, input_size, dtype=jnp.int32)

    out = transformer_forward(tokens, params, n_heads)        # bf16 matmuls, f32 accum
    out = jax.block_until_ready(out)
    assert out.shape == (B, output_size), out.shape

    ref = transformer_reference(tokens, params, n_heads)
    max_err = float(jnp.max(jnp.abs(out - ref)))
    assert jnp.allclose(out, ref, atol=5e-2, rtol=5e-2), f"max_abs_err={max_err}"

    print("KERNEL_OK")
</pallas_src>

<mosaic_0001>
module attributes {stable_mosaic.version = 11 : i64} {
  func.func @fused_transformer_kernel(%arg0: i32, %arg1: memref<1x8x32xf32, #tpu.memory_space<vmem>>, %arg2: memref<8x32xf32, #tpu.memory_space<vmem>>, %arg3: memref<2x32x192xbf16, #tpu.memory_space<vmem>>, %arg4: memref<2x64x32xbf16, #tpu.memory_space<vmem>>, %arg5: memref<3x8x128xf32, #tpu.memory_space<vmem>>, %arg6: memref<32x8xbf16, #tpu.memory_space<vmem>>, %arg7: memref<1x1x8xf32, #tpu.memory_space<vmem>>) attributes {dimension_semantics = [#tpu.dimension_semantics<parallel>], iteration_bounds = array<i64: 2>, scalar_prefetch = 0 : i64, scratch_operands = 0 : i64, tpu.core_type = #tpu.core_type<tc>, window_params = [{transform_indices = @transform_0, window_bounds = array<i64: 1, 8, 32>}, {pipeline_mode = #tpu.pipeline_mode<synchronous>, transform_indices = @transform_1, window_bounds = array<i64: 8, 32>}, {pipeline_mode = #tpu.pipeline_mode<synchronous>, transform_indices = @transform_2, window_bounds = array<i64: 2, 32, 192>}, {pipeline_mode = #tpu.pipeline_mode<synchronous>, transform_indices = @transform_3, window_bounds = array<i64: 2, 64, 32>}, {pipeline_mode = #tpu.pipeline_mode<synchronous>, transform_indices = @transform_4, window_bounds = array<i64: 3, 8, 128>}, {pipeline_mode = #tpu.pipeline_mode<synchronous>, transform_indices = @transform_5, window_bounds = array<i64: 32, 8>}, {transform_indices = @transform_6, window_bounds = array<i64: 1, 1, 8>}]} {
    %c0 = arith.constant 0 : index
    %c0_0 = arith.constant 0 : index
    %c0_1 = arith.constant 0 : index
    %0 = vector.load %arg1[%c0, %c0_0, %c0_1] : memref<1x8x32xf32, #tpu.memory_space<vmem>>, vector<1x8x32xf32>
    %1 = vector.shape_cast %0 : vector<1x8x32xf32> to vector<8x32xf32>
    %cst = arith.constant 5.65685415 : f32
    %2 = vector.broadcast %cst : f32 to vector<8x32xf32>
    %3 = arith.mulf %1, %2 : vector<8x32xf32>
    %c0_2 = arith.constant 0 : index
    %c0_3 = arith.constant 0 : index
    %4 = vector.load %arg2[%c0_2, %c0_3] : memref<8x32xf32, #tpu.memory_space<vmem>>, vector<8x32xf32>
    %5 = arith.addf %3, %4 : vector<8x32xf32>
    %c0_4 = arith.constant 0 : index
    %c0_5 = arith.constant 0 : index
    %c0_6 = arith.constant 0 : index
    %6 = vector.load %arg3[%c0_4, %c0_5, %c0_6] : memref<2x32x192xbf16, #tpu.memory_space<vmem>>, vector<1x32x192xbf16>
    %7 = vector.shape_cast %6 : vector<1x32x192xbf16> to vector<32x192xbf16>
    %c0_7 = arith.constant 0 : index
    %c0_8 = arith.constant 0 : index
    %c0_9 = arith.constant 0 : index
    %8 = vector.load %arg5[%c0_7, %c0_8, %c0_9] : memref<3x8x128xf32, #tpu.memory_space<vmem>>, vector<1x8x128xf32>
    %9 = vector.shape_cast %8 : vector<1x8x128xf32> to vector<8x128xf32>
    %10 = vector.extract_strided_slice %9 {offsets = [0, 0], sizes = [1, 96], strides = [1, 1]} : vector<8x128xf32> to vector<1x96xf32>
    %11 = vector.shape_cast %10 : vector<1x96xf32> to vector<96xf32>
    %12 = vector.extract_strided_slice %9 {offsets = [1, 0], sizes = [1, 32], strides = [1, 1]} : vector<8x128xf32> to vector<1x32xf32>
    %13 = vector.shape_cast %12 : vector<1x32xf32> to vector<32xf32>
    %14 = vector.extract_strided_slice %9 {offsets = [2, 0], sizes = [1, 32], strides = [1, 1]} : vector<8x128xf32> to vector<1x32xf32>
    %15 = vector.shape_cast %14 : vector<1x32xf32> to vector<32xf32>
    %16 = vector.extract_strided_slice %9 {offsets = [3, 0], sizes = [1, 32], strides = [1, 1]} : vector<8x128xf32> to vector<1x32xf32>
    %17 = vector.shape_cast %16 : vector<1x32xf32> to vector<32xf32>
    %18 = vector.extract_strided_slice %9 {offsets = [4, 0], sizes = [1, 64], strides = [1, 1]} : vector<8x128xf32> to vector<1x64xf32>
    %19 = vector.shape_cast %18 : vector<1x64xf32> to vector<64xf32>
    %20 = vector.extract_strided_slice %9 {offsets = [5, 0], sizes = [1, 32], strides = [1, 1]} : vector<8x128xf32> to vector<1x32xf32>
    %21 = vector.shape_cast %20 : vector<1x32xf32> to vector<32xf32>
    %22 = vector.extract_strided_slice %9 {offsets = [6, 0], sizes = [1, 32], strides = [1, 1]} : vector<8x128xf32> to vector<1x32xf32>
    %23 = vector.shape_cast %22 : vector<1x32xf32> to vector<32xf32>
    %24 = vector.extract_strided_slice %9 {offsets = [7, 0], sizes = [1, 32], strides = [1, 1]} : vector<8x128xf32> to vector<1x32xf32>
    %25 = vector.shape_cast %24 : vector<1x32xf32> to vector<32xf32>
    %26 = vector.extract_strided_slice %7 {offsets = [0, 0], sizes = [32, 96], strides = [1, 1]} : vector<32x192xbf16> to vector<32x96xbf16>
    %27 = arith.truncf %5 : vector<8x32xf32> to vector<8x32xbf16>
    %cst_10 = arith.constant dense<0.000000e+00> : vector<8x96xf32>
    %28 = tpu.matmul %27, %26, %cst_10 {dimension_numbers = #tpu.dot_dimension_numbers<[1], [0], [0], [1], [0, 0, 1, 1], [], []>} : vector<8x32xbf16>, vector<32x96xbf16>, vector<8x96xf32> -> vector<8x96xf32>
    %29 = vector.shape_cast %11 : vector<96xf32> to vector<1x96xf32>
    %30 = vector.broadcast %29 : vector<1x96xf32> to vector<8x96xf32>
    %31 = arith.addf %28, %30 : vector<8x96xf32>
    %32 = vector.extract_strided_slice %31 {offsets = [0, 0], sizes = [8, 32], strides = [1, 1]} : vector<8x96xf32> to vector<8x32xf32>
    %33 = vector.shape_cast %32 : vector<8x32xf32> to vector<8x4x8xf32>
    %34 = vector.extract_strided_slice %31 {offsets = [0, 32], sizes = [8, 32], strides = [1, 1]} : vector<8x96xf32> to vector<8x32xf32>
    %35 = vector.shape_cast %34 : vector<8x32xf32> to vector<8x4x8xf32>
    %36 = vector.extract_strided_slice %31 {offsets = [0, 64], sizes = [8, 32], strides = [1, 1]} : vector<8x96xf32> to vector<8x32xf32>
    %37 = vector.shape_cast %36 : vector<8x32xf32> to vector<8x4x8xf32>
    %38 = arith.truncf %33 : vector<8x4x8xf32> to vector<8x4x8xbf16>
    %39 = arith.truncf %35 : vector<8x4x8xf32> to vector<8x4x8xbf16>
    "tpu.trace_start"() <{level = 10 : i32, message = "qhd,khd->hqk"}> : () -> ()
    %cst_11 = arith.constant dense<0.000000e+00> : vector<4x8x8xf32>
    %40 = tpu.matmul %38, %39, %cst_11 {dimension_numbers = #tpu.dot_dimension_numbers<[2], [2], [0], [0], [0, 1, 0, 0, 1, 0], [1], [1]>} : vector<8x4x8xbf16>, vector<8x4x8xbf16>, vector<4x8x8xf32> -> vector<4x8x8xf32>
    "tpu.trace_stop"() : () -> ()
    %cst_12 = arith.constant 0.353553385 : f32
    %41 = vector.broadcast %cst_12 : f32 to vector<4x8x8xf32>
    %42 = arith.mulf %40, %41 : vector<4x8x8xf32>
    %cst_13 = arith.constant dense<0xFF800000> : vector<4x8xf32>
    %43 = vector.multi_reduction <maximumf>, %42, %cst_13 [2] : vector<4x8x8xf32> to vector<4x8xf32>
    %44 = vector.shape_cast %43 : vector<4x8xf32> to vector<4x8x1xf32>
    %45 = vector.broadcast %44 : vector<4x8x1xf32> to vector<4x8x8xf32>
    %46 = arith.subf %42, %45 : vector<4x8x8xf32>
    %47 = math.exp %46 : vector<4x8x8xf32>
    %cst_14 = arith.constant dense<0.000000e+00> : vector<4x8xf32>
    %48 = vector.multi_reduction <add>, %47, %cst_14 [2] : vector<4x8x8xf32> to vector<4x8xf32>
    %49 = vector.shape_cast %48 : vector<4x8xf32> to vector<4x8x1xf32>
    %50 = tpu.reciprocal %49 {approx = true} : vector<4x8x1xf32> -> vector<4x8x1xf32>
    %51 = vector.broadcast %50 : vector<4x8x1xf32> to vector<4x8x8xf32>
    %52 = arith.mulf %47, %51 : vector<4x8x8xf32>
    %53 = arith.truncf %52 : vector<4x8x8xf32> to vector<4x8x8xbf16>
    %54 = arith.truncf %37 : vector<8x4x8xf32> to vector<8x4x8xbf16>
    "tpu.trace_start"() <{level = 10 : i32, message = "hqk,khd->qhd"}> : () -> ()
    %cst_15 = arith.constant dense<0.000000e+00> : vector<4x8x8xf32>
    %55 = tpu.matmul %54, %53, %cst_15 {dimension_numbers = #tpu.dot_dimension_numbers<[0], [2], [2], [1], [0, 1, 0, 2, 1, 1], [1], [0]>} : vector<8x4x8xbf16>, vector<4x8x8xbf16>, vector<4x8x8xf32> -> vector<4x8x8xf32>
    %56 = tpu.transpose %55, [2, 0, 1] : vector<4x8x8xf32> -> vector<8x4x8xf32>
    "tpu.trace_stop"() : () -> ()
    %57 = vector.shape_cast %56 : vector<8x4x8xf32> to vector<8x32xf32>
    %58 = vector.extract_strided_slice %7 {offsets = [0, 96], sizes = [32, 32], strides = [1, 1]} : vector<32x192xbf16> to vector<32x32xbf16>
    %59 = arith.truncf %57 : vector<8x32xf32> to vector<8x32xbf16>
    %cst_16 = arith.constant dense<0.000000e+00> : vector<8x32xf32>
    %60 = tpu.matmul %59, %58, %cst_16 {dimension_numbers = #tpu.dot_dimension_numbers<[1], [0], [0], [1], [0, 0, 1, 1], [], []>} : vector<8x32xbf16>, vector<32x32xbf16>, vector<8x32xf32> -> vector<8x32xf32>
    %61 = vector.shape_cast %13 : vector<32xf32> to vector<1x32xf32>
    %62 = vector.broadcast %61 : vector<1x32xf32> to vector<8x32xf32>
    %63 = arith.addf %60, %62 : vector<8x32xf32>
    %64 = arith.addf %5, %63 : vector<8x32xf32>
    %cst_17 = arith.constant dense<0.000000e+00> : vector<8xf32>
    %65 = vector.multi_reduction <add>, %64, %cst_17 [1] : vector<8x32xf32> to vector<8xf32>
    %66 = vector.shape_cast %65 : vector<8xf32> to vector<8x1xf32>
    %cst_18 = arith.constant 3.200000e+01 : f32
    %67 = vector.broadcast %cst_18 : f32 to vector<8x1xf32>
    %68 = arith.divf %66, %67 : vector<8x1xf32>
    %69 = vector.broadcast %68 : vector<8x1xf32> to vector<8x32xf32>
    %70 = arith.subf %64, %69 : vector<8x32xf32>
    %71 = arith.mulf %70, %70 : vector<8x32xf32>
    %cst_19 = arith.constant dense<0.000000e+00> : vector<8xf32>
    %72 = vector.multi_reduction <add>, %71, %cst_19 [1] : vector<8x32xf32> to vector<8xf32>
    %73 = vector.shape_cast %72 : vector<8xf32> to vector<8x1xf32>
    %cst_20 = arith.constant 3.200000e+01 : f32
    %74 = vector.broadcast %cst_20 : f32 to vector<8x1xf32>
    %75 = arith.divf %73, %74 : vector<8x1xf32>
    %76 = vector.broadcast %68 : vector<8x1xf32> to vector<8x32xf32>
    %77 = arith.subf %64, %76 : vector<8x32xf32>
    %cst_21 = arith.constant 9.99999974E-6 : f32
    %78 = vector.broadcast %cst_21 : f32 to vector<8x1xf32>
    %79 = arith.addf %75, %78 : vector<8x1xf32>
    %80 = math.rsqrt %79 : vector<8x1xf32>
    %81 = vector.broadcast %80 : vector<8x1xf32> to vector<8x32xf32>
    %82 = arith.mulf %77, %81 : vector<8x32xf32>
    %83 = vector.shape_cast %15 : vector<32xf32> to vector<1x32xf32>
    %84 = vector.broadcast %83 : vector<1x32xf32> to vector<8x32xf32>
    %85 = arith.mulf %82, %84 : vector<8x32xf32>
    %86 = vector.shape_cast %17 : vector<32xf32> to vector<1x32xf32>
    %87 = vector.broadcast %86 : vector<1x32xf32> to vector<8x32xf32>
    %88 = arith.addf %85, %87 : vector<8x32xf32>
    %89 = vector.extract_strided_slice %7 {offsets = [0, 128], sizes = [32, 64], strides = [1, 1]} : vector<32x192xbf16> to vector<32x64xbf16>
    %90 = arith.truncf %88 : vector<8x32xf32> to vector<8x32xbf16>
    %cst_22 = arith.constant dense<0.000000e+00> : vector<8x64xf32>
    %91 = tpu.matmul %90, %89, %cst_22 {dimension_numbers = #tpu.dot_dimension_numbers<[1], [0], [0], [1], [0, 0, 1, 1], [], []>} : vector<8x32xbf16>, vector<32x64xbf16>, vector<8x64xf32> -> vector<8x64xf32>
    %92 = vector.shape_cast %19 : vector<64xf32> to vector<1x64xf32>
    %93 = vector.broadcast %92 : vector<1x64xf32> to vector<8x64xf32>
    %94 = arith.addf %91, %93 : vector<8x64xf32>
    %cst_23 = arith.constant 0.000000e+00 : f32
    %95 = vector.broadcast %cst_23 : f32 to vector<8x64xf32>
    %96 = arith.maximumf %94, %95 : vector<8x64xf32>
    %c0_24 = arith.constant 0 : index
    %c0_25 = arith.constant 0 : index
    %c0_26 = arith.constant 0 : index
    %97 = vector.load %arg4[%c0_24, %c0_25, %c0_26] : memref<2x64x32xbf16, #tpu.memory_space<vmem>>, vector<1x64x32xbf16>
    %98 = vector.shape_cast %97 : vector<1x64x32xbf16> to vector<64x32xbf16>
    %99 = arith.truncf %96 : vector<8x64xf32> to vector<8x64xbf16>
    %cst_27 = arith.constant dense<0.000000e+00> : vector<8x32xf32>
    %100 = tpu.matmul %99, %98, %cst_27 {dimension_numbers = #tpu.dot_dimension_numbers<[1], [0], [0], [1], [0, 0, 1, 1], [], []>} : vector<8x64xbf16>, vector<64x32xbf16>, vector<8x32xf32> -> vector<8x32xf32>
    %101 = vector.shape_cast %21 : vector<32xf32> to vector<1x32xf32>
    %102 = vector.broadcast %101 : vector<1x32xf32> to vector<8x32xf32>
    %103 = arith.addf %100, %102 : vector<8x32xf32>
    %104 = arith.addf %88, %103 : vector<8x32xf32>
    %cst_28 = arith.constant dense<0.000000e+00> : vector<8xf32>
    %105 = vector.multi_reduction <add>, %104, %cst_28 [1] : vector<8x32xf32> to vector<8xf32>
    %106 = vector.shape_cast %105 : vector<8xf32> to vector<8x1xf32>
    %cst_29 = arith.constant 3.200000e+01 : f32
    %107 = vector.broadcast %cst_29 : f32 to vector<8x1xf32>
    %108 = arith.divf %106, %107 : vector<8x1xf32>
    %109 = vector.broadcast %108 : vector<8x1xf32> to vector<8x32xf32>
    %110 = arith.subf %104, %109 : vector<8x32xf32>
    %111 = arith.mulf %110, %110 : vector<8x32xf32>
    %cst_30 = arith.constant dense<0.000000e+00> : vector<8xf32>
    %112 = vector.multi_reduction <add>, %111, %cst_30 [1] : vector<8x32xf32> to vector<8xf32>
    %113 = vector.shape_cast %112 : vector<8xf32> to vector<8x1xf32>
    %cst_31 = arith.constant 3.200000e+01 : f32
    %114 = vector.broadcast %cst_31 : f32 to vector<8x1xf32>
    %115 = arith.divf %113, %114 : vector<8x1xf32>
    %116 = vector.broadcast %108 : vector<8x1xf32> to vector<8x32xf32>
    %117 = arith.subf %104, %116 : vector<8x32xf32>
    %cst_32 = arith.constant 9.99999974E-6 : f32
    %118 = vector.broadcast %cst_32 : f32 to vector<8x1xf32>
    %119 = arith.addf %115, %118 : vector<8x1xf32>
    %120 = math.rsqrt %119 : vector<8x1xf32>
    %121 = vector.broadcast %120 : vector<8x1xf32> to vector<8x32xf32>
    %122 = arith.mulf %117, %121 : vector<8x32xf32>
    %123 = vector.shape_cast %23 : vector<32xf32> to vector<1x32xf32>
    %124 = vector.broadcast %123 : vector<1x32xf32> to vector<8x32xf32>
    %125 = arith.mulf %122, %124 : vector<8x32xf32>
    %126 = vector.shape_cast %25 : vector<32xf32> to vector<1x32xf32>
    %127 = vector.broadcast %126 : vector<1x32xf32> to vector<8x32xf32>
    %128 = arith.addf %125, %127 : vector<8x32xf32>
    %c1 = arith.constant 1 : index
    %c0_33 = arith.constant 0 : index
    %c0_34 = arith.constant 0 : index
    %129 = vector.load %arg3[%c1, %c0_33, %c0_34] : memref<2x32x192xbf16, #tpu.memory_space<vmem>>, vector<1x32x192xbf16>
    %130 = vector.shape_cast %129 : vector<1x32x192xbf16> to vector<32x192xbf16>
    %c1_35 = arith.constant 1 : index
    %c0_36 = arith.constant 0 : index
    %c0_37 = arith.constant 0 : index
    %131 = vector.load %arg5[%c1_35, %c0_36, %c0_37] : memref<3x8x128xf32, #tpu.memory_space<vmem>>, vector<1x8x128xf32>
    %132 = vector.shape_cast %131 : vector<1x8x128xf32> to vector<8x128xf32>
    %133 = vector.extract_strided_slice %132 {offsets = [0, 0], sizes = [1, 96], strides = [1, 1]} : vector<8x128xf32> to vector<1x96xf32>
    %134 = vector.shape_cast %133 : vector<1x96xf32> to vector<96xf32>
    %135 = vector.extract_strided_slice %132 {offsets = [1, 0], sizes = [1, 32], strides = [1, 1]} : vector<8x128xf32> to vector<1x32xf32>
    %136 = vector.shape_cast %135 : vector<1x32xf32> to vector<32xf32>
    %137 = vector.extract_strided_slice %132 {offsets = [2, 0], sizes = [1, 32], strides = [1, 1]} : vector<8x128xf32> to vector<1x32xf32>
    %138 = vector.shape_cast %137 : vector<1x32xf32> to vector<32xf32>
    %139 = vector.extract_strided_slice %132 {offsets = [3, 0], sizes = [1, 32], strides = [1, 1]} : vector<8x128xf32> to vector<1x32xf32>
    %140 = vector.shape_cast %139 : vector<1x32xf32> to vector<32xf32>
    %141 = vector.extract_strided_slice %132 {offsets = [4, 0], sizes = [1, 64], strides = [1, 1]} : vector<8x128xf32> to vector<1x64xf32>
    %142 = vector.shape_cast %141 : vector<1x64xf32> to vector<64xf32>
    %143 = vector.extract_strided_slice %132 {offsets = [5, 0], sizes = [1, 32], strides = [1, 1]} : vector<8x128xf32> to vector<1x32xf32>
    %144 = vector.shape_cast %143 : vector<1x32xf32> to vector<32xf32>
    %145 = vector.extract_strided_slice %132 {offsets = [6, 0], sizes = [1, 32], strides = [1, 1]} : vector<8x128xf32> to vector<1x32xf32>
    %146 = vector.shape_cast %145 : vector<1x32xf32> to vector<32xf32>
    %147 = vector.extract_strided_slice %132 {offsets = [7, 0], sizes = [1, 32], strides = [1, 1]} : vector<8x128xf32> to vector<1x32xf32>
    %148 = vector.shape_cast %147 : vector<1x32xf32> to vector<32xf32>
    %149 = vector.extract_strided_slice %130 {offsets = [0, 0], sizes = [32, 96], strides = [1, 1]} : vector<32x192xbf16> to vector<32x96xbf16>
    %150 = arith.truncf %128 : vector<8x32xf32> to vector<8x32xbf16>
    %cst_38 = arith.constant dense<0.000000e+00> : vector<8x96xf32>
    %151 = tpu.matmul %150, %149, %cst_38 {dimension_numbers = #tpu.dot_dimension_numbers<[1], [0], [0], [1], [0, 0, 1, 1], [], []>} : vector<8x32xbf16>, vector<32x96xbf16>, vector<8x96xf32> -> vector<8x96xf32>
    %152 = vector.shape_cast %134 : vector<96xf32> to vector<1x96xf32>
    %153 = vector.broadcast %152 : vector<1x96xf32> to vector<8x96xf32>
    %154 = arith.addf %151, %153 : vector<8x96xf32>
    %155 = vector.extract_strided_slice %154 {offsets = [0, 0], sizes = [8, 32], strides = [1, 1]} : vector<8x96xf32> to vector<8x32xf32>
    %156 = vector.shape_cast %155 : vector<8x32xf32> to vector<8x4x8xf32>
    %157 = vector.extract_strided_slice %154 {offsets = [0, 32], sizes = [8, 32], strides = [1, 1]} : vector<8x96xf32> to vector<8x32xf32>
    %158 = vector.shape_cast %157 : vector<8x32xf32> to vector<8x4x8xf32>
    %159 = vector.extract_strided_slice %154 {offsets = [0, 64], sizes = [8, 32], strides = [1, 1]} : vector<8x96xf32> to vector<8x32xf32>
    %160 = vector.shape_cast %159 : vector<8x32xf32> to vector<8x4x8xf32>
    %161 = arith.truncf %156 : vector<8x4x8xf32> to vector<8x4x8xbf16>
    %162 = arith.truncf %158 : vector<8x4x8xf32> to vector<8x4x8xbf16>
    "tpu.trace_start"() <{level = 10 : i32, message = "qhd,khd->hqk"}> : () -> ()
    %cst_39 = arith.constant dense<0.000000e+00> : vector<4x8x8xf32>
    %163 = tpu.matmul %161, %162, %cst_39 {dimension_numbers = #tpu.dot_dimension_numbers<[2], [2], [0], [0], [0, 1, 0, 0, 1, 0], [1], [1]>} : vector<8x4x8xbf16>, vector<8x4x8xbf16>, vector<4x8x8xf32> -> vector<4x8x8xf32>
    "tpu.trace_stop"() : () -> ()
    %cst_40 = arith.constant 0.353553385 : f32
    %164 = vector.broadcast %cst_40 : f32 to vector<4x8x8xf32>
    %165 = arith.mulf %163, %164 : vector<4x8x8xf32>
    %cst_41 = arith.constant dense<0xFF800000> : vector<4x8xf32>
    %166 = vector.multi_reduction <maximumf>, %165, %cst_41 [2] : vector<4x8x8xf32> to vector<4x8xf32>
    %167 = vector.shape_cast %166 : vector<4x8xf32> to vector<4x8x1xf32>
    %168 = vector.broadcast %167 : vector<4x8x1xf32> to vector<4x8x8xf32>
    %169 = arith.subf %165, %168 : vector<4x8x8xf32>
    %170 = math.exp %169 : vector<4x8x8xf32>
    %cst_42 = arith.constant dense<0.000000e+00> : vector<4x8xf32>
    %171 = vector.multi_reduction <add>, %170, %cst_42 [2] : vector<4x8x8xf32> to vector<4x8xf32>
    %172 = vector.shape_cast %171 : vector<4x8xf32> to vector<4x8x1xf32>
    %173 = tpu.reciprocal %172 {approx = true} : vector<4x8x1xf32> -> vector<4x8x1xf32>
    %174 = vector.broadcast %173 : vector<4x8x1xf32> to vector<4x8x8xf32>
    %175 = arith.mulf %170, %174 : vector<4x8x8xf32>
    %176 = arith.truncf %175 : vector<4x8x8xf32> to vector<4x8x8xbf16>
    %177 = arith.truncf %160 : vector<8x4x8xf32> to vector<8x4x8xbf16>
    "tpu.trace_start"() <{level = 10 : i32, message = "hqk,khd->qhd"}> : () -> ()
    %cst_43 = arith.constant dense<0.000000e+00> : vector<4x8x8xf32>
    %178 = tpu.matmul %177, %176, %cst_43 {dimension_numbers = #tpu.dot_dimension_numbers<[0], [2], [2], [1], [0, 1, 0, 2, 1, 1], [1], [0]>} : vector<8x4x8xbf16>, vector<4x8x8xbf16>, vector<4x8x8xf32> -> vector<4x8x8xf32>
    %179 = tpu.transpose %178, [2, 0, 1] : vector<4x8x8xf32> -> vector<8x4x8xf32>
    "tpu.trace_stop"() : () -> ()
    %180 = vector.shape_cast %179 : vector<8x4x8xf32> to vector<8x32xf32>
    %181 = vector.extract_strided_slice %130 {offsets = [0, 96], sizes = [32, 32], strides = [1, 1]} : vector<32x192xbf16> to vector<32x32xbf16>
    %182 = arith.truncf %180 : vector<8x32xf32> to vector<8x32xbf16>
    %cst_44 = arith.constant dense<0.000000e+00> : vector<8x32xf32>
    %183 = tpu.matmul %182, %181, %cst_44 {dimension_numbers = #tpu.dot_dimension_numbers<[1], [0], [0], [1], [0, 0, 1, 1], [], []>} : vector<8x32xbf16>, vector<32x32xbf16>, vector<8x32xf32> -> vector<8x32xf32>
    %184 = vector.shape_cast %136 : vector<32xf32> to vector<1x32xf32>
    %185 = vector.broadcast %184 : vector<1x32xf32> to vector<8x32xf32>
    %186 = arith.addf %183, %185 : vector<8x32xf32>
    %187 = arith.addf %128, %186 : vector<8x32xf32>
    %cst_45 = arith.constant dense<0.000000e+00> : vector<8xf32>
    %188 = vector.multi_reduction <add>, %187, %cst_45 [1] : vector<8x32xf32> to vector<8xf32>
    %189 = vector.shape_cast %188 : vector<8xf32> to vector<8x1xf32>
    %cst_46 = arith.constant 3.200000e+01 : f32
    %190 = vector.broadcast %cst_46 : f32 to vector<8x1xf32>
    %191 = arith.divf %189, %190 : vector<8x1xf32>
    %192 = vector.broadcast %191 : vector<8x1xf32> to vector<8x32xf32>
    %193 = arith.subf %187, %192 : vector<8x32xf32>
    %194 = arith.mulf %193, %193 : vector<8x32xf32>
    %cst_47 = arith.constant dense<0.000000e+00> : vector<8xf32>
    %195 = vector.multi_reduction <add>, %194, %cst_47 [1] : vector<8x32xf32> to vector<8xf32>
    %196 = vector.shape_cast %195 : vector<8xf32> to vector<8x1xf32>
    %cst_48 = arith.constant 3.200000e+01 : f32
    %197 = vector.broadcast %cst_48 : f32 to vector<8x1xf32>
    %198 = arith.divf %196, %197 : vector<8x1xf32>
    %199 = vector.broadcast %191 : vector<8x1xf32> to vector<8x32xf32>
    %200 = arith.subf %187, %199 : vector<8x32xf32>
    %cst_49 = arith.constant 9.99999974E-6 : f32
    %201 = vector.broadcast %cst_49 : f32 to vector<8x1xf32>
    %202 = arith.addf %198, %201 : vector<8x1xf32>
    %203 = math.rsqrt %202 : vector<8x1xf32>
    %204 = vector.broadcast %203 : vector<8x1xf32> to vector<8x32xf32>
    %205 = arith.mulf %200, %204 : vector<8x32xf32>
    %206 = vector.shape_cast %138 : vector<32xf32> to vector<1x32xf32>
    %207 = vector.broadcast %206 : vector<1x32xf32> to vector<8x32xf32>
    %208 = arith.mulf %205, %207 : vector<8x32xf32>
    %209 = vector.shape_cast %140 : vector<32xf32> to vector<1x32xf32>
    %210 = vector.broadcast %209 : vector<1x32xf32> to vector<8x32xf32>
    %211 = arith.addf %208, %210 : vector<8x32xf32>
    %212 = vector.extract_strided_slice %130 {offsets = [0, 128], sizes = [32, 64], strides = [1, 1]} : vector<32x192xbf16> to vector<32x64xbf16>
    %213 = arith.truncf %211 : vector<8x32xf32> to vector<8x32xbf16>
    %cst_50 = arith.constant dense<0.000000e+00> : vector<8x64xf32>
    %214 = tpu.matmul %213, %212, %cst_50 {dimension_numbers = #tpu.dot_dimension_numbers<[1], [0], [0], [1], [0, 0, 1, 1], [], []>} : vector<8x32xbf16>, vector<32x64xbf16>, vector<8x64xf32> -> vector<8x64xf32>
    %215 = vector.shape_cast %142 : vector<64xf32> to vector<1x64xf32>
    %216 = vector.broadcast %215 : vector<1x64xf32> to vector<8x64xf32>
    %217 = arith.addf %214, %216 : vector<8x64xf32>
    %cst_51 = arith.constant 0.000000e+00 : f32
    %218 = vector.broadcast %cst_51 : f32 to vector<8x64xf32>
    %219 = arith.maximumf %217, %218 : vector<8x64xf32>
    %c1_52 = arith.constant 1 : index
    %c0_53 = arith.constant 0 : index
    %c0_54 = arith.constant 0 : index
    %220 = vector.load %arg4[%c1_52, %c0_53, %c0_54] : memref<2x64x32xbf16, #tpu.memory_space<vmem>>, vector<1x64x32xbf16>
    %221 = vector.shape_cast %220 : vector<1x64x32xbf16> to vector<64x32xbf16>
    %222 = arith.truncf %219 : vector<8x64xf32> to vector<8x64xbf16>
    %cst_55 = arith.constant dense<0.000000e+00> : vector<8x32xf32>
    %223 = tpu.matmul %222, %221, %cst_55 {dimension_numbers = #tpu.dot_dimension_numbers<[1], [0], [0], [1], [0, 0, 1, 1], [], []>} : vector<8x64xbf16>, vector<64x32xbf16>, vector<8x32xf32> -> vector<8x32xf32>
    %224 = vector.shape_cast %144 : vector<32xf32> to vector<1x32xf32>
    %225 = vector.broadcast %224 : vector<1x32xf32> to vector<8x32xf32>
    %226 = arith.addf %223, %225 : vector<8x32xf32>
    %227 = arith.addf %211, %226 : vector<8x32xf32>
    %cst_56 = arith.constant dense<0.000000e+00> : vector<8xf32>
    %228 = vector.multi_reduction <add>, %227, %cst_56 [1] : vector<8x32xf32> to vector<8xf32>
    %229 = vector.shape_cast %228 : vector<8xf32> to vector<8x1xf32>
    %cst_57 = arith.constant 3.200000e+01 : f32
    %230 = vector.broadcast %cst_57 : f32 to vector<8x1xf32>
    %231 = arith.divf %229, %230 : vector<8x1xf32>
    %232 = vector.broadcast %231 : vector<8x1xf32> to vector<8x32xf32>
    %233 = arith.subf %227, %232 : vector<8x32xf32>
    %234 = arith.mulf %233, %233 : vector<8x32xf32>
    %cst_58 = arith.constant dense<0.000000e+00> : vector<8xf32>
    %235 = vector.multi_reduction <add>, %234, %cst_58 [1] : vector<8x32xf32> to vector<8xf32>
    %236 = vector.shape_cast %235 : vector<8xf32> to vector<8x1xf32>
    %cst_59 = arith.constant 3.200000e+01 : f32
    %237 = vector.broadcast %cst_59 : f32 to vector<8x1xf32>
    %238 = arith.divf %236, %237 : vector<8x1xf32>
    %239 = vector.broadcast %231 : vector<8x1xf32> to vector<8x32xf32>
    %240 = arith.subf %227, %239 : vector<8x32xf32>
    %cst_60 = arith.constant 9.99999974E-6 : f32
    %241 = vector.broadcast %cst_60 : f32 to vector<8x1xf32>
    %242 = arith.addf %238, %241 : vector<8x1xf32>
    %243 = math.rsqrt %242 : vector<8x1xf32>
    %244 = vector.broadcast %243 : vector<8x1xf32> to vector<8x32xf32>
    %245 = arith.mulf %240, %244 : vector<8x32xf32>
    %246 = vector.shape_cast %146 : vector<32xf32> to vector<1x32xf32>
    %247 = vector.broadcast %246 : vector<1x32xf32> to vector<8x32xf32>
    %248 = arith.mulf %245, %247 : vector<8x32xf32>
    %249 = vector.shape_cast %148 : vector<32xf32> to vector<1x32xf32>
    %250 = vector.broadcast %249 : vector<1x32xf32> to vector<8x32xf32>
    %251 = arith.addf %248, %250 : vector<8x32xf32>
    %c2 = arith.constant 2 : index
    %c0_61 = arith.constant 0 : index
    %c0_62 = arith.constant 0 : index
    %252 = vector.load %arg5[%c2, %c0_61, %c0_62] : memref<3x8x128xf32, #tpu.memory_space<vmem>>, vector<1x8x128xf32>
    %253 = vector.shape_cast %252 : vector<1x8x128xf32> to vector<8x128xf32>
    %254 = vector.extract_strided_slice %251 {offsets = [0, 0], sizes = [1, 32], strides = [1, 1]} : vector<8x32xf32> to vector<1x32xf32>
    %255 = vector.extract_strided_slice %253 {offsets = [0, 0], sizes = [1, 32], strides = [1, 1]} : vector<8x128xf32> to vector<1x32xf32>
    %256 = vector.shape_cast %255 : vector<1x32xf32> to vector<32xf32>
    %257 = vector.extract_strided_slice %253 {offsets = [1, 0], sizes = [1, 32], strides = [1, 1]} : vector<8x128xf32> to vector<1x32xf32>
    %258 = vector.shape_cast %257 : vector<1x32xf32> to vector<32xf32>
    %cst_63 = arith.constant dense<0.000000e+00> : vector<1xf32>
    %259 = vector.multi_reduction <add>, %254, %cst_63 [1] : vector<1x32xf32> to vector<1xf32>
    %260 = vector.shape_cast %259 : vector<1xf32> to vector<1x1xf32>
    %cst_64 = arith.constant 3.200000e+01 : f32
    %261 = vector.broadcast %cst_64 : f32 to vector<1x1xf32>
    %262 = arith.divf %260, %261 : vector<1x1xf32>
    %263 = vector.broadcast %262 : vector<1x1xf32> to vector<1x32xf32>
    %264 = arith.subf %254, %263 : vector<1x32xf32>
    %265 = arith.mulf %264, %264 : vector<1x32xf32>
    %cst_65 = arith.constant dense<0.000000e+00> : vector<1xf32>
    %266 = vector.multi_reduction <add>, %265, %cst_65 [1] : vector<1x32xf32> to vector<1xf32>
    %267 = vector.shape_cast %266 : vector<1xf32> to vector<1x1xf32>
    %cst_66 = arith.constant 3.200000e+01 : f32
    %268 = vector.broadcast %cst_66 : f32 to vector<1x1xf32>
    %269 = arith.divf %267, %268 : vector<1x1xf32>
    %270 = vector.broadcast %262 : vector<1x1xf32> to vector<1x32xf32>
    %271 = arith.subf %254, %270 : vector<1x32xf32>
    %cst_67 = arith.constant 9.99999974E-6 : f32
    %272 = vector.broadcast %cst_67 : f32 to vector<1x1xf32>
    %273 = arith.addf %269, %272 : vector<1x1xf32>
    %274 = math.rsqrt %273 : vector<1x1xf32>
    %275 = vector.broadcast %274 : vector<1x1xf32> to vector<1x32xf32>
    %276 = arith.mulf %271, %275 : vector<1x32xf32>
    %277 = vector.shape_cast %256 : vector<32xf32> to vector<1x32xf32>
    %278 = arith.mulf %276, %277 : vector<1x32xf32>
    %279 = vector.shape_cast %258 : vector<32xf32> to vector<1x32xf32>
    %280 = arith.addf %278, %279 : vector<1x32xf32>
    %c0_68 = arith.constant 0 : index
    %c0_69 = arith.constant 0 : index
    %281 = vector.load %arg6[%c0_68, %c0_69] : memref<32x8xbf16, #tpu.memory_space<vmem>>, vector<32x8xbf16>
    %282 = arith.truncf %280 : vector<1x32xf32> to vector<1x32xbf16>
    %cst_70 = arith.constant dense<0.000000e+00> : vector<1x8xf32>
    %283 = tpu.matmul %282, %281, %cst_70 {dimension_numbers = #tpu.dot_dimension_numbers<[1], [0], [0], [1], [0, 0, 1, 1], [], []>} : vector<1x32xbf16>, vector<32x8xbf16>, vector<1x8xf32> -> vector<1x8xf32>
    %284 = vector.extract_strided_slice %253 {offsets = [2, 0], sizes = [1, 8], strides = [1, 1]} : vector<8x128xf32> to vector<1x8xf32>
    %285 = vector.shape_cast %284 : vector<1x8xf32> to vector<8xf32>
    %286 = vector.shape_cast %285 : vector<8xf32> to vector<1x8xf32>
    %287 = arith.addf %283, %286 : vector<1x8xf32>
    %c0_71 = arith.constant 0 : index
    %c0_72 = arith.constant 0 : index
    %c0_73 = arith.constant 0 : index
    %288 = vector.load %arg7[%c0_71, %c0_72, %c0_73] : memref<1x1x8xf32, #tpu.memory_space<vmem>>, vector<1x1x8xf32>
    %289 = vector.shape_cast %288 : vector<1x1x8xf32> to vector<1x8xf32>
    %290 = vector.shape_cast %287 : vector<1x8xf32> to vector<1x1x8xf32>
    tpu.vector_store %arg7[%c0_71, %c0_72, %c0_73], %290 {strides = array<i32>} : memref<1x1x8xf32, #tpu.memory_space<vmem>>, vector<1x1x8xf32>,
    return
  }
  func.func @transform_0(%arg0: i32) -> (i32, i32, i32) {
    %c0_i32 = arith.constant 0 : i32
    %c0_i32_0 = arith.constant 0 : i32
    %c0_i32_1 = arith.constant 0 : i32
    return %arg0, %c0_i32, %c0_i32_0 : i32, i32, i32
  }
  func.func @transform_1(%arg0: i32) -> (i32, i32) {
    %c0_i32 = arith.constant 0 : i32
    %c0_i32_0 = arith.constant 0 : i32
    %c0_i32_1 = arith.constant 0 : i32
    return %c0_i32, %c0_i32_0 : i32, i32
  }
  func.func @transform_2(%arg0: i32) -> (i32, i32, i32) {
    %c0_i32 = arith.constant 0 : i32
    %c0_i32_0 = arith.constant 0 : i32
    %c0_i32_1 = arith.constant 0 : i32
    %c0_i32_2 = arith.constant 0 : i32
    return %c0_i32, %c0_i32_0, %c0_i32_1 : i32, i32, i32
  }
  func.func @transform_3(%arg0: i32) -> (i32, i32, i32) {
    %c0_i32 = arith.constant 0 : i32
    %c0_i32_0 = arith.constant 0 : i32
    %c0_i32_1 = arith.constant 0 : i32
    %c0_i32_2 = arith.constant 0 : i32
    return %c0_i32, %c0_i32_0, %c0_i32_1 : i32, i32, i32
  }
  func.func @transform_4(%arg0: i32) -> (i32, i32, i32) {
    %c0_i32 = arith.constant 0 : i32
    %c0_i32_0 = arith.constant 0 : i32
    %c0_i32_1 = arith.constant 0 : i32
    %c0_i32_2 = arith.constant 0 : i32
    return %c0_i32, %c0_i32_0, %c0_i32_1 : i32, i32, i32
  }
  func.func @transform_5(%arg0: i32) -> (i32, i32) {
    %c0_i32 = arith.constant 0 : i32
    %c0_i32_0 = arith.constant 0 : i32
    %c0_i32_1 = arith.constant 0 : i32
    return %c0_i32, %c0_i32_0 : i32, i32
  }
  func.func @transform_6(%arg0: i32) -> (i32, i32, i32) {
    %c0_i32 = arith.constant 0 : i32
    %c0_i32_0 = arith.constant 0 : i32
    %c0_i32_1 = arith.constant 0 : i32
    return %arg0, %c0_i32, %c0_i32_0 : i32, i32, i32
  }
}

</mosaic_0001>

<bundles_post_ra>
// kernel: tpu_custom_call.1
= control target key start
LH: loop header
LB: loop body
LE: loop exit
PB: predicated region body
PF: predicated region fallthrough
CT: control target
= control target key end

     0   :  { %11 = vsyncpa [#allocation3], 0  ;;  %s6025_s0 = inlined_call_operand.vmem [shape: f32[2,8,32], index: 0, kind: input, shape index: {}]   ;;  %s6026_s1 = inlined_call_operand.vmem [shape: f32[8,32], index: 1, kind: input, shape index: {}]   ;;  %s6027_s2 = inlined_call_operand.vmem [shape: bf16[2,32,192], index: 2, kind: input, shape index: {}]   ;;  %s6028_s3 = inlined_call_operand.vmem [shape: bf16[2,64,32], index: 3, kind: input, shape index: {}]   ;;  %s6029_s4 = inlined_call_operand.vmem [shape: f32[3,8,128], index: 4, kind: input, shape index: {}]   ;;  %s6030_s5 = inlined_call_operand.vmem [shape: bf16[32,8], index: 5, kind: input, shape index: {}]   ;;  %s6031_s6 = inlined_call_operand.hbm [shape: f32[2,1,8], index: 6, kind: output, shape index: {}]  }
   0x1   :  { %13 = vsyncpa [#allocation3 + $0x1], 0  ;;  %s5291_s21 = smov 0   ;;  %s5293_s22 = smov 0  }
   0x2   :  { %s5295_s23 = smov 0   ;;  %s5297_s24 = smov 0  }
   0x3 LB: > { %s5312_s25 = sadd.s32 4294967295, %s5239_s24   ;;  %s4740_s26 = sadd.s32 4294967294, %s5239_s24   ;;  %s5239_s24 = sphi %s5297_s24, %s6037_s24   ;;  %s5235_s23 = sphi %s5295_s23, %s6036_s23   ;;  %s5231_s22 = sphi %s5293_s22, %s6035_s22   ;;  %s5227_s21 = sphi %s5291_s21, %s6034_s21  }
   0x4   : > { %s5316_s27 = sadd.s32 1, %s5239_s24   ;;  %s157_s28 = sadd.s32 1, %s5235_s23 }
   0x5   : > { %s154_s29 = ssub.s32 %s5239_s24, %s5316_s27  ;;  %p167_p0 = scmp.ne.s32.totalorder %s5235_s23, %s5231_s22 }
   0x6   : > { %p155_p1 = scmp.eq.s32.totalorder %s154_s29, 0  ;;  %p168_p2 = scmp.eq.s32.totalorder %s5312_s25, 1 }
   0x7   : > { %p173_p3 = scmp.ne.s32.totalorder %s5231_s22, %s5227_s21  ;;  %p174_p4 = scmp.eq.s32.totalorder %s4740_s26, 1 }
   0x8   : > { %s5327_s30 = scalar_select %p155_p1, %s5235_s23, %s157_s28  }
   0x9   : > { %p5329_p5 = por %p168_p2, %p167_p0  ;;  %p5333_p6 = por %p174_p4, %p173_p3 }
   0xa   : > { %p4743_p7 = scmp.ge.s32.totalorder %s5239_s24, 1  ;;  %p214_p8 = scmp.lt.s32.totalorder %s5239_s24, 3 }
   0xc   : > { %p215_p9 = pnand %p4743_p7, %p214_p8 }
   0xd   : > { %v5109_v0 = vld [vmem:[%s6027_s2] ss:$8 sps:$4 sm:$0xff] (!%p215_p9)   ;;  %v5241_v1 = vmov (!%p215_p9), 0.0   ;;  %vm5242_vm0 = vmmov (!%p215_p9), 0   ;;  %p242_p10 = scmp.lt.s32.totalorder (!%p215_p9), %s5312_s25, 1  ;;  %vm273_vm1 = vcmask (!%p215_p9), 261120   ;;  %v257_v8 = vlaneseq (!%p215_p9) }
   0xe   : > { %218 = sbr.rel (%p215_p9) target bundleno = 6815 (0x1a9f), region = 44  ;;  %4880 = vmatprep.subr.bf16.mxu0 (!%p215_p9), %v5241_v1  ;;  %4884 = vmatprep.mubr.msk.bf16.mxu0 (!%p215_p9), %vm5242_vm0, %v5241_v1  ;;  %v5112_v2 = vld [vmem:[%s6027_s2 + $0x10] ss:$8 sps:$4 sm:$0xff] (!%p215_p9)   ;;  %v249_v3 = vld [vmem:[%s6026_s1] sm:$0xff] (!%p215_p9)  ;;  %s5243_s28 = smov (!%p215_p9), 104   ;;  %vm1055_vm2 = vcmask (!%p215_p9), 1043456  }
   0xf   : > { %4881 = vmatpush3.bf16.msra.mxu0 (!%p215_p9), %v5109_v0  ;;  %4888 = vmatprep.subr.bf16.mxu1 (!%p215_p9), %v5241_v1  ;;  %v5368_v9 = vshrl.u32 (!%p215_p9), %v257_v8, 7  ;;  %v255_v11 = vld [vmem:[%s6029_s4] sm:$0xff] (!%p215_p9)  ;;  %s5244_s29 = smov (!%p215_p9), 120   ;;  %s5245_s9 = smov (!%p215_p9), 96   ;;  %v5247_v21 = vmov (!%p215_p9), 1983009808  }
  0x10   : > { %4882 = vmatprep.subr.bf16.mxu0 (!%p215_p9), %v5241_v1  ;;  %4890 = vmatprep.mubr.msk.bf16.mxu1 (!%p215_p9), %vm5242_vm0, %v5241_v1  ;;  %s5246_s10 = smov (!%p215_p9), 112   ;;  %v330_v22 = vunpack.c.l.s4 (!%p215_p9), %v5247_v21  ;;  %v5248_v24 = vmov (!%p215_p9), 1934713408   ;;  %s5250_s11 = smov (!%p215_p9), 64   ;;  %vm1051_vm3 = vcmask (!%p215_p9), 64512   ;;  %vm2176_vm4 = vcmask (!%p215_p9), 130048  }
  0x11   : > { %v259_v10 = vsub.s32 (!%p215_p9), 0, %v5368_v9  ;;  %v362_v25 = vunpack.c.l.s4 (!%p215_p9), %v5248_v24  ;;  %s5251_s18 = smov (!%p215_p9), 32   ;;  %s5253_s20 = smov (!%p215_p9), 8   ;;  %vm2178_vm5 = vcmask (!%p215_p9), 195584   ;;  %vm2353_vm6 = vcmask (!%p215_p9), 523264  }
  0x12   : > { %v331_v23 = vunpack.c.0.s8 (!%p215_p9), %v330_v22  ;;  %s5254_s26 = smov (!%p215_p9), 24   ;;  %vm4589_vm7 = vcmask (!%p215_p9), 253952   ;;  %vm4670_vm8 = vcmask (!%p215_p9), 57344   ;;  %s5255_s16 = smov (!%p215_p9), [#allocation2]  }
  0x13   : > { %4883 = vmatpush3.bf16.msra.mxu0 (!%p215_p9), %v5112_v2  ;;  %v260_v12 = vrot.slane (!%p215_p9), %v255_v11, %v259_v10  ;;  %v363_v29 = vunpack.c.0.s8 (!%p215_p9), %v362_v25  ;;  %s5181_s17 = sshll.u32 (!%p215_p9), %s5255_s16, 4  ;;  %s5182_s17 = int_to_ptr.vmem [resolvable:$false] %s5181_s17 }
  0x14   : > { %4900 = vmatprep.subr.bf16.mxu0 (!%p215_p9), %v5241_v1  ;;  %v5399_v28 = vsub.s32 (!%p215_p9), %v331_v23, %v5368_v9 }
  0x15   : > { %s243_s13 = scalar_select %p242_p10, %s5312_s25, 1  ;;  %v5406_v40 = vsub.s32 %v363_v29, %v5368_v9 }
  0x17   : > { %s4744_s14 = sshll.u32 %s243_s13, 3 }
  0x18   : > { %s245_s19 = scalar_lea.vmem %s6025_s0, %s4744_s14 }
  0x19   : > { %v247_v4 = vld [vmem:[%s245_s19] sm:$0xff]  ;;  %s5252_s19 = smov 16  }
  0x1a   : > { %v248_v5 = vmul.f32 5.656854, %v247_v4 }
  0x1c   : > { %v5361_v6 = vadd.f32 %v249_v3, %v248_v5 }
  0x1e   : > { %v256_v7 = vpack.c.bf16 %v5361_v6, %v5361_v6 }
  0x20   : > { %4885 = vmatmul.mubr.msk.bf16.vlgmr.msra.gmra.mrb[0].mxu0 %vm273_vm1, %v256_v7 }
  0x21   : > { %4902 = vmatprep.mubr.msk.bf16.mxu0 %vm5242_vm0, %v5241_v1 }
  0xf3   : > { %v311_v13 = vpop.f32.mrb[0].mxu0 }
  0xf4   : > { %v5376_v14 = vadd.f32 %v311_v13, %v260_v12  ;;  %v4886_v15 = vpop.f32.mrb[1].mxu0 }
  0xf5   : > { %v314_v16 = vpop.f32.mrb[2].mxu0 }
  0xf6   : > { %324 = vrot.lane.b32.xlu1 %v5376_v14, %s5243_s28  ;;  %318 = vrot.lane.b32.xlu0 %v5376_v14, %s5244_s29  ;;  %v4887_v17 = vpop.f32.mrb[3].mxu0 }
  0xfa   : > { %395 = vrot.lane.b32.xlu1 %v5376_v14, %s5245_s9  ;;  %321 = vrot.lane.b32.xlu0 %v5376_v14, %s5246_s10 }
 0x168   : > { %v5386_v18 = vpop.permute.xlu0 %318  ;;  %v5390_v19 = vpop.permute.xlu1 %324 }
 0x169   : > { %397 = vrot.lane.b32.xlu0 %v5386_v18, %s5245_s9 }
 0x16c   : > { %v5392_v20 = vpop.permute.xlu0 %321  ;;  %v396_v26 = vpop.permute.xlu1 %395 }
 0x16d   : > { %401 = vrot.lane.b32.xlu0 %v5390_v19, %s5245_s9  ;;  %399 = vrot.lane.b32.xlu1 %v5392_v20, %s5245_s9 }
 0x1db   : > { %v398_v27 = vpop.permute.xlu0 %397 }
 0x1df   : > { %v400_v30 = vpop.permute.xlu1 %399  ;;  %v402_v31 = vpop.permute.xlu0 %401 }
 0x1e0   : > { %v407_v32 = vcombine.low %v396_v26, %v400_v30  ;;  %v408_v33 = vcombine.high %v396_v26, %v400_v30  ;;  %v423_v34 = vcombine.low %v398_v27, %v402_v31  ;;  %v424_v35 = vcombine.high %v398_v27, %v402_v31 }
 0x1e2   : > { %v415_v36 = vrot.slane %v407_v32, %v5399_v28  ;;  %v422_v37 = vrot.slane %v408_v33, %v5399_v28  ;;  %v431_v38 = vrot.slane %v423_v34, %v5399_v28  ;;  %v438_v39 = vrot.slane %v424_v35, %v5399_v28 }
 0x1e4   : > { %v440_v41 = vcombine.high %v415_v36, %v431_v38  ;;  %v439_v42 = vcombine.low %v415_v36, %v431_v38  ;;  %v455_v43 = vcombine.low %v422_v37, %v438_v39  ;;  %v456_v46 = vcombine.high %v422_v37, %v438_v39 }
 0x1e5   : > { %v5249_v36 = vmov 0  }
 0x1e6   : > { %v454_v44 = vrot.slane %v440_v41, %v5406_v40  ;;  %v447_v45 = vrot.slane %v439_v42, %v5406_v40  ;;  %v463_v49 = vrot.slane %v455_v43, %v5406_v40  ;;  %v470_v51 = vrot.slane %v456_v46, %v5406_v40 }
 0x1e8   : > { %v565_v47 = vpack.c.bf16 %v454_v44, %v454_v44  ;;  %v563_v48 = vpack.c.bf16 %v447_v45, %v447_v45  ;;  %v472_v50 = vcombine.high %v454_v44, %v5241_v1  ;;  %v567_v52 = vpack.c.bf16 %v463_v49, %v463_v49 }
 0x1e9   : > { %v473_v54 = vcombine.high %v463_v49, %v5241_v1  ;;  %v471_v55 = vcombine.high %v447_v45, %v5241_v1  ;;  %v474_v58 = vcombine.high %v470_v51, %v5241_v1  ;;  %v569_v60 = vpack.c.bf16 %v470_v51, %v470_v51 }
 0x1ea   : > { %665 = vxpose.xlu0.c.b16.start.end [1/1] (short) (narrow) %v565_v47, 16  ;;  %633 = vxpose.xlu1.c.b16.start.end [1/1] (short) (narrow) %v563_v48, 16  ;;  %v566_v53 = vpack.c.bf16 %v472_v50, %v472_v50 }
 0x1eb   : > { %v568_v56 = vpack.c.bf16 %v473_v54, %v473_v54  ;;  %v564_v57 = vpack.c.bf16 %v471_v55, %v471_v55  ;;  %v570_v59 = vpack.c.bf16 %v474_v58, %v474_v58  ;;  %v343_v54 = vcombine.low %v5386_v18, %v5390_v19 }
 0x1ec   : > { %v344_v55 = vcombine.high %v5386_v18, %v5390_v19 }
 0x1ed   : > { %v351_v58 = vrot.slane %v343_v54, %v5399_v28 }
 0x1ee   : > { %697 = vxpose.xlu0.c.b16.start.end [1/1] (short) (narrow) %v567_v52, 16  ;;  %681 = vxpose.xlu1.c.b16.start.end [1/1] (short) (narrow) %v566_v53, 16  ;;  %v327_v52 = vcombine.low %v5376_v14, %v5392_v20  ;;  %v328_v53 = vcombine.high %v5376_v14, %v5392_v20 }
 0x1f2   : > { %713 = vxpose.xlu1.c.b16.start.end [1/1] (short) (narrow) %v568_v56, 16  ;;  %649 = vxpose.xlu0.c.b16.start.end [1/1] (short) (narrow) %v564_v57, 16  ;;  %v335_v56 = vrot.slane %v327_v52, %v5399_v28  ;;  %v342_v57 = vrot.slane %v328_v53, %v5399_v28 }
 0x1f6   : > { %745 = vxpose.xlu1.c.b16.start.end [1/1] (short) (narrow) %v570_v59, 16  ;;  %729 = vxpose.xlu0.c.b16.start.end [1/1] (short) (narrow) %v569_v60, 16  ;;  %v358_v59 = vrot.slane %v344_v55, %v5399_v28  ;;  %v359_v60 = vcombine.low %v335_v56, %v351_v58 }
 0x250   : > { %v673_v61 = vpop.trf.xlu0  ;;  %v641_v62 = vpop.trf.xlu1 }
 0x254   : > { %v705_v63 = vpop.trf.xlu0  ;;  %v689_v0 = vpop.trf.xlu1 }
 0x255   : > { %v761_v4 = vcombine.low %v641_v62, %v705_v63  ;;  %v375_v62 = vcombine.low %v342_v57, %v358_v59  ;;  %v376_v63 = vcombine.high %v342_v57, %v358_v59 }
 0x257   : > { %v768_v13 = vrot.slane %v761_v4, %v5399_v28 }
 0x258   : > { %v721_v2 = vpop.trf.xlu1  ;;  %v657_v3 = vpop.trf.xlu0 }
 0x259   : > { %v795_v5 = vcombine.low %v657_v3, %v721_v2  ;;  %v383_v2 = vrot.slane %v375_v62, %v5406_v40 }
 0x25b   : > { %v802_v15 = vrot.slane %v795_v5, %v5399_v28 }
 0x25c   : > { %v753_v7 = vpop.trf.xlu1  ;;  %v737_v8 = vpop.trf.xlu0 }
 0x25d   : > { %v803_v11 = vcombine.low %v689_v0, %v753_v7  ;;  %v769_v12 = vcombine.low %v673_v61, %v737_v8  ;;  %v360_v61 = vcombine.high %v335_v56, %v351_v58  ;;  %v393_v7 = vcombine.high %v383_v2, %v5241_v1 }
 0x25f   : > { %v810_v16 = vrot.slane %v803_v11, %v5399_v28  ;;  %v776_v17 = vrot.slane %v769_v12, %v5399_v28 }
 0x261   : > { %v811_v21 = vcombine.low %v802_v15, %v810_v16  ;;  %v812_v22 = vcombine.high %v802_v15, %v810_v16  ;;  %v777_v23 = vcombine.low %v768_v13, %v776_v17  ;;  %v778_v24 = vcombine.high %v768_v13, %v776_v17 }
 0x263   : > { %v785_v25 = vrot.slane %v777_v23, %v5406_v40  ;;  %v819_v26 = vrot.slane %v811_v21, %v5406_v40  ;;  %v792_v27 = vrot.slane %v778_v24, %v5406_v40  ;;  %v826_v29 = vrot.slane %v812_v22, %v5406_v40 }
 0x265   : > { %v831_v30 = vpack.i.b16 %v819_v26, %v785_v25  ;;  %v833_v31 = vshrl.u32 %v785_v25, 16  ;;  %v834_v32 = vshrl.u32 %v819_v26, 16  ;;  %v849_v33 = vshrl.u32 %v792_v27, 16 }
 0x266   : > { %v850_v35 = vshrl.u32 %v826_v29, 16  ;;  %v793_v37 = vcombine.high %v785_v25, %v5249_v36  ;;  %v827_v38 = vcombine.high %v819_v26, %v5249_v36  ;;  %v847_v39 = vpack.i.b16 %v826_v29, %v792_v27 }
 0x267   : > { %861 = vxpose.xlu0.c.b16.start.end [1/1] (short) (narrow) %v831_v30, 16  ;;  %v835_v34 = vpack.i.b16 %v834_v32, %v833_v31  ;;  %v794_v41 = vcombine.high %v792_v27, %v5249_v36  ;;  %v828_v45 = vcombine.high %v826_v29, %v5249_v36 }
 0x268   : > { %v851_v42 = vpack.i.b16 %v850_v35, %v849_v33  ;;  %v841_v43 = vshrl.u32 %v793_v37, 16  ;;  %v842_v44 = vshrl.u32 %v827_v38, 16  ;;  %v839_v46 = vpack.i.b16 %v827_v38, %v793_v37 }
 0x269   : > { %877 = vxpose.xlu1.c.b16.start.end [1/1] (short) (narrow) %v835_v34, 16  ;;  %v857_v48 = vshrl.u32 %v794_v41, 16  ;;  %v858_v49 = vshrl.u32 %v828_v45, 16  ;;  %v855_v50 = vpack.i.b16 %v828_v45, %v794_v41 }
 0x26a   : > { %v843_v47 = vpack.i.b16 %v842_v44, %v841_v43 }
 0x26b   : > { %925 = vxpose.xlu0.c.b16.start.end [1/1] (short) (narrow) %v847_v39, 16  ;;  %v859_v51 = vpack.i.b16 %v858_v49, %v857_v48 }
 0x26d   : > { %941 = vxpose.xlu1.c.b16.start.end [1/1] (short) (narrow) %v851_v42, 16 }
 0x26f   : > { %893 = vxpose.xlu0.c.b16.start.end [1/1] (short) (narrow) %v839_v46, 16 }
 0x271   : > { %909 = vxpose.xlu1.c.b16.start.end [1/1] (short) (narrow) %v843_v47, 16 }
 0x273   : > { %957 = vxpose.xlu0.c.b16.start.end [1/1] (short) (narrow) %v855_v50, 16 }
 0x275   : > { %973 = vxpose.xlu1.c.b16.start.end [1/1] (short) (narrow) %v859_v51, 16 }
 0x279   : > { %477 = vrot.lane.b32.xlu1 %v5386_v18, %s5250_s11  ;;  %v390_v18 = vrot.slane %v376_v63, %v5406_v40 }
 0x27b   : > { %v394_v8 = vcombine.high %v390_v18, %v5241_v1 }
 0x27c   : > { %475 = vrot.lane.b32.xlu0 %v5376_v14, %s5250_s11  ;;  %v367_v14 = vrot.slane %v359_v60, %v5406_v40 }
 0x27d   : > { %479 = vrot.lane.b32.xlu1 %v5392_v20, %s5250_s11  ;;  %v374_v20 = vrot.slane %v360_v61, %v5406_v40 }
 0x27e   : > { %v391_v4 = vcombine.high %v367_v14, %v5241_v1  ;;  %v4748_v16 = vpack.c.bf16 %v383_v2, %v367_v14 }
 0x27f   : > { %v392_v5 = vcombine.high %v374_v20, %v5241_v1  ;;  %v4749_v17 = vpack.c.bf16 %v390_v18, %v374_v20 }
 0x280   : > { %481 = vrot.lane.b32.xlu0 %v5390_v19, %s5250_s11  ;;  %v4750_v13 = vpack.c.bf16 %v393_v7, %v391_v4  ;;  %v578_v30 = vrot.slane %v4748_v16, %v5399_v28 }
 0x281   : > { %v4751_v15 = vpack.c.bf16 %v394_v8, %v392_v5  ;;  %v586_v31 = vrot.slane %v4749_v17, %v5399_v28 }
 0x282   : > { %v603_v26 = vrot.slane %v4750_v13, %v5399_v28 }
 0x283   : > { %v611_v27 = vrot.slane %v4751_v15, %v5399_v28  ;;  %v587_v41 = vcombine.low %v578_v30, %v586_v31 }
 0x285   : > { %v612_v39 = vcombine.low %v603_v26, %v611_v27  ;;  %v594_v47 = vrot.slane %v587_v41, %v5406_v40 }
 0x287   : > { %v619_v45 = vrot.slane %v612_v39, %v5406_v40  ;;  %v595_v58 = vcombine.high %v594_v47, %v5249_v36 }
 0x289   : > { %v620_v55 = vcombine.high %v619_v45, %v5249_v36  ;;  %v623_v57 = vpack.i.b16 %v619_v45, %v594_v47  ;;  %v625_v62 = vshrl.u32 %v619_v45, 16 }
 0x28b   : > { %v629_v60 = vpack.i.b16 %v620_v55, %v595_v58  ;;  %v631_v18 = vshrl.u32 %v620_v55, 16 }
 0x2cd   : > { %v869_v0 = vpop.trf.xlu0 }
 0x2cf   : > { %v885_v19 = vpop.trf.xlu1 }
 0x2d1   : > { %v933_v3 = vpop.trf.xlu0 }
 0x2d2   : > { %v989_v22 = vcombine.low %v869_v0, %v933_v3  ;;  %v624_v0 = vshrl.u32 %v594_v47, 16 }
 0x2d3   : > { %v949_v11 = vpop.trf.xlu1 }
 0x2d4   : > { %v1014_v24 = vcombine.low %v885_v19, %v949_v11  ;;  %v996_v32 = vrot.slane %v989_v22, %v5399_v28  ;;  %v626_v20 = vpack.i.b16 %v625_v62, %v624_v0  ;;  %v630_v19 = vshrl.u32 %v595_v58, 16 }
 0x2d5   : > { %v901_v12 = vpop.trf.xlu0 }
 0x2d6   : > { %v1021_v35 = vrot.slane %v1014_v24, %v5399_v28  ;;  %v632_v3 = vpack.i.b16 %v631_v18, %v630_v19 }
 0x2d7   : > { %v917_v21 = vpop.trf.xlu1 }
 0x2d9   : > { %v965_v23 = vpop.trf.xlu0 }
 0x2da   : > { %v997_v25 = vcombine.low %v901_v12, %v965_v23 }
 0x2db   : > { %v981_v29 = vpop.trf.xlu1 }
 0x2dc   : > { %v1004_v33 = vrot.slane %v997_v25, %v5399_v28  ;;  %v1022_v34 = vcombine.low %v917_v21, %v981_v29 }
 0x2de   : > { %v1005_v37 = vcombine.low %v996_v32, %v1004_v33  ;;  %v1029_v38 = vrot.slane %v1022_v34, %v5399_v28 }
 0x2e0   : > { %v1030_v42 = vcombine.low %v1021_v35, %v1029_v38  ;;  %v1012_v43 = vrot.slane %v1005_v37, %v5406_v40 }
 0x2e2   : > { %v1037_v44 = vrot.slane %v1030_v42, %v5406_v40  ;;  %v1013_v46 = vcombine.high %v1012_v43, %v5249_v36  ;;  %v1042_v50 = vshrl.u32 %v1012_v43, 16 }
 0x2e4   : > { %v1041_v48 = vpack.i.b16 %v1037_v44, %v1012_v43  ;;  %v1038_v49 = vcombine.high %v1037_v44, %v5249_v36  ;;  %v1043_v51 = vshrl.u32 %v1037_v44, 16  ;;  %v1048_v63 = vshrl.u32 %v1013_v46, 16 }
 0x2e6   : > { %v1057_v52 = vsel %vm1055_vm2, %v1041_v48, 0  ;;  %v1047_v53 = vpack.i.b16 %v1038_v49, %v1013_v46  ;;  %v1044_v54 = vpack.i.b16 %v1043_v51, %v1042_v50  ;;  %v1049_v61 = vshrl.u32 %v1038_v49, 16 }
 0x2e7   : > { %4889 = vmatpush3.bf16.msra.mxu1 %v1057_v52 }
 0x2e8   : > { %v1149_v56 = vsel %vm1055_vm2, %v1047_v53, 0  ;;  %4894 = vmatprep.subr.bf16.mxu1 %v5241_v1  ;;  %v1103_v59 = vsel %vm1055_vm2, %v1044_v54, 0  ;;  %v1050_v14 = vpack.i.b16 %v1049_v61, %v1048_v63 }
 0x2e9   : > { %4901 = vmatpush3.bf16.msra.mxu0 %v1149_v56 }
 0x2ea   : > { %4891 = vmatmul.mubr.msk.bf16.vlgmr.msra.gmra.mrb[0].mxu1 %vm1051_vm3, %v623_v57  ;;  %4912 = vmatprep.subr.bf16.mxu0 %v5241_v1  ;;  %v1195_v2 = vsel %vm1055_vm2, %v1050_v14, 0 }
 0x2eb   : > { %4895 = vmatpush3.bf16.msra.mxu1 %v1103_v59  ;;  %4896 = vmatprep.mubr.msk.bf16.mxu1 %vm5242_vm0, %v5241_v1  ;;  %v478_v35 = vpop.permute.xlu1 %477 }
 0x2ec   : > { %4903 = vmatmul.mubr.msk.bf16.vlgmr.msra.gmra.mrb[4].mxu0 %vm1051_vm3, %v629_v60  ;;  %4906 = vmatprep.subr.bf16.mxu1 %v5241_v1 }
 0x2ed   : > { %4914 = vmatprep.mubr.msk.bf16.mxu0 %vm5242_vm0, %v5241_v1 }
 0x2ee   : > { %v476_v34 = vpop.permute.xlu0 %475 }
 0x2ef   : > { %v480_v38 = vpop.permute.xlu1 %479 }
 0x2f0   : > { %v487_v41 = vcombine.low %v476_v34, %v480_v38  ;;  %v488_v47 = vcombine.high %v476_v34, %v480_v38 }
 0x2f2   : > { %4897 = vmatmul.mubr.msk.bf16.vlgmr.msra.gmra.mrb[4].mxu1 %vm1051_vm3, %v626_v20  ;;  %v482_v37 = vpop.permute.xlu0 %481  ;;  %v495_v43 = vrot.slane %v487_v41, %v5399_v28  ;;  %v502_v51 = vrot.slane %v488_v47, %v5399_v28 }
 0x2f3   : > { %4907 = vmatpush3.bf16.msra.mxu1 %v1195_v2  ;;  %4908 = vmatprep.mubr.msk.bf16.mxu1 %vm5242_vm0, %v5241_v1  ;;  %v503_v39 = vcombine.low %v478_v35, %v482_v37  ;;  %v504_v45 = vcombine.high %v478_v35, %v482_v37 }
 0x2f4   : > { %4918 = vmatprep.subr.bf16.mxu1 %v5241_v1 }
 0x2f5   : > { %v511_v42 = vrot.slane %v503_v39, %v5399_v28  ;;  %v518_v48 = vrot.slane %v504_v45, %v5399_v28 }
 0x2f7   : > { %v519_v44 = vcombine.low %v495_v43, %v511_v42  ;;  %v520_v50 = vcombine.high %v495_v43, %v511_v42  ;;  %v535_v54 = vcombine.low %v502_v51, %v518_v48  ;;  %v536_v58 = vcombine.high %v502_v51, %v518_v48 }
 0x2f9   : > { %v527_v46 = vrot.slane %v519_v44, %v5406_v40  ;;  %v534_v53 = vrot.slane %v520_v50, %v5406_v40  ;;  %v543_v57 = vrot.slane %v535_v54, %v5406_v40  ;;  %v550_v60 = vrot.slane %v536_v58, %v5406_v40 }
 0x2fa   : > { %4909 = vmatmul.mubr.msk.bf16.vlgmr.msra.gmra.mrb[8].mxu1 %vm1051_vm3, %v632_v3 }
 0x2fb   : > { %4920 = vmatprep.mubr.msk.bf16.mxu1 %vm5242_vm0, %v5241_v1  ;;  %v551_v49 = vcombine.high %v527_v46, %v5241_v1  ;;  %v1289_v55 = vpack.c.bf16 %v527_v46, %v527_v46  ;;  %v1291_v56 = vpack.c.bf16 %v534_v53, %v534_v53  ;;  %v1293_v59 = vpack.c.bf16 %v543_v57, %v543_v57 }
 0x2fc   : > { %v1295_v61 = vpack.c.bf16 %v550_v60, %v550_v60  ;;  %v552_v0 = vcombine.high %v534_v53, %v5241_v1  ;;  %v553_v20 = vcombine.high %v543_v57, %v5241_v1  ;;  %v554_v18 = vcombine.high %v550_v60, %v5241_v1 }
 0x2fd   : > { %v1290_v52 = vpack.c.bf16 %v551_v49, %v551_v49 }
 0x2fe   : > { %v1292_v14 = vpack.c.bf16 %v552_v0, %v552_v0  ;;  %v1294_v2 = vpack.c.bf16 %v553_v20, %v553_v20  ;;  %v1296_v19 = vpack.c.bf16 %v554_v18, %v554_v18 }
 0x3bd   : > { %v1093_v4 = vpop.f32.mrb[0].mxu1 }
 0x3be   : > { %v5492_v5 = vmul.f32 0.35355338, %v1093_v4  ;;  %v4892_v7 = vpop.f32.mrb[1].mxu1 }
 0x3bf   : > { %v1096_v8 = vpop.f32.mrb[2].mxu1  ;;  %v1185_v11 = vpop.f32.mrb[4].mxu0 }
 0x3c0   : > { %v5494_v12 = vmul.f32 0.35355338, %v1185_v11  ;;  %v4893_v13 = vpop.f32.mrb[3].mxu1  ;;  %v4904_v15 = vpop.f32.mrb[5].mxu0  ;;  %v1241_v16 = vsel %vm1051_vm3, %v5492_v5, -inf }
 0x3c1   : > { %1242 = vmax.xlane.f32.xlu0 %v1241_v16  ;;  %v1188_v17 = vpop.f32.mrb[6].mxu0 }
 0x3c2   : > { %v4905_v21 = vpop.f32.mrb[7].mxu0  ;;  %v1247_v22 = vsel %vm1051_vm3, %v5494_v12, -inf }
 0x3c5   : > { %v1139_v23 = vpop.f32.mrb[4].mxu1  ;;  %1248 = vmax.xlane.f32.xlu0 %v1247_v22 }
 0x3c6   : > { %v5500_v24 = vmul.f32 0.35355338, %v1139_v23  ;;  %v4898_v25 = vpop.f32.mrb[5].mxu1 }
 0x3c7   : > { %v1142_v26 = vpop.f32.mrb[6].mxu1 }
 0x3c8   : > { %v4899_v27 = vpop.f32.mrb[7].mxu1  ;;  %v1244_v29 = vsel %vm1051_vm3, %v5500_v24, -inf }
 0x3c9   : > { %1245 = vmax.xlane.f32.xlu1 %v1244_v29 }
 0x3cd   : > { %v1231_v30 = vpop.f32.mrb[8].mxu1 }
 0x3ce   : > { %v4910_v31 = vpop.f32.mrb[9].mxu1  ;;  %v5513_v62 = vmul.f32 0.35355338, %v1231_v30 }
 0x3cf   : > { %v1234_v32 = vpop.f32.mrb[10].mxu1 }
 0x3d0   : > { %v4911_v33 = vpop.f32.mrb[11].mxu1  ;;  %v1250_v63 = vsel %vm1051_vm3, %v5513_v62, -inf }
 0x3f2   : > { %1313 = vxpose.xlu0.c.b16.start.end [1/1] (short) (narrow) %v1290_v52, 16 }
 0x3f6   : > { %1297 = vxpose.xlu1.c.b16.start.end [1/1] (short) (narrow) %v1289_v55, 16  ;;  %1329 = vxpose.xlu0.c.b16.start.end [1/1] (short) (narrow) %v1291_v56, 16 }
 0x3fa   : > { %1361 = vxpose.xlu0.c.b16.start.end [1/1] (short) (narrow) %v1293_v59, 16 }
 0x3fe   : > { %1393 = vxpose.xlu0.c.b16.start.end [1/1] (short) (narrow) %v1295_v61, 16 }
 0x403   : > { %1251 = vmax.xlane.f32.xlu1 %v1250_v63 }
 0x430   : > { %1345 = vxpose.xlu1.c.b16.start.end [1/1] (short) (narrow) %v1292_v14, 16 }
 0x434   : > { %1377 = vxpose.xlu1.c.b16.start.end [1/1] (short) (narrow) %v1294_v2, 16 }
 0x438   : > { %1409 = vxpose.xlu1.c.b16.start.end [1/1] (short) (narrow) %v1296_v19, 16 }
 0x44e   : > { %v1243_v3 = vpop.xlane.xlu0 %1242 }
 0x44f   : > { %v1253_v47 = vsub.f32 %v5492_v5, %v1243_v3 }
 0x451   : > { %v1257_v55 = vmul.f32 1.442695, %v1253_v47 }
 0x452   : > { %v1249_v4 = vpop.xlane.xlu0 %1248 }
 0x453   : > { %v1255_v56 = vsub.f32 %v5494_v12, %v1249_v4  ;;  %5131 = vpow2.f32 %v1257_v55 }
 0x455   : > { %v1261_v63 = vmul.f32 1.442695, %v1255_v56 }
 0x456   : > { %v1246_v11 = vpop.xlane.xlu1 %1245 }
 0x457   : > { %v1254_v51 = vsub.f32 %v5500_v24, %v1246_v11 }
 0x458   : > { %v1321_v7 = vpop.trf.xlu0 }
 0x459   : > { %v1259_v59 = vmul.f32 1.442695, %v1254_v51 }
 0x45b   : > { %5133 = vpow2.f32 %v1259_v59 }
 0x45c   : > { %v1337_v8 = vpop.trf.xlu0  ;;  %v1305_v13 = vpop.trf.xlu1  ;;  %5135 = vpow2.f32 %v1261_v63 }
 0x45d   : > { %v5132_v14 = vpop.eup %5131 }
 0x45e   : > { %v1265_v20 = vsel %vm1051_vm3, %v5132_v14, 0.0 }
 0x460   : > { %v1369_v15 = vpop.trf.xlu0 }
 0x461   : > { %v1425_v21 = vcombine.low %v1305_v13, %v1369_v15 }
 0x463   : > { %v1432_v25 = vrot.slane %v1425_v21, %v5399_v28 }
 0x464   : > { %v1401_v17 = vpop.trf.xlu0 }
 0x465   : > { %v1433_v22 = vcombine.low %v1337_v8, %v1401_v17  ;;  %v5134_v12 = vpop.eup %5133 }
 0x466   : > { %v5136_v2 = vpop.eup %5135 }
 0x467   : > { %v1440_v26 = vrot.slane %v1433_v22, %v5399_v28  ;;  %v1271_v19 = vsel %vm1051_vm3, %v5136_v2, 0.0 }
 0x469   : > { %v1441_v30 = vcombine.low %v1432_v25, %v1440_v26  ;;  %v1442_v41 = vcombine.high %v1432_v25, %v1440_v26 }
 0x46b   : > { %v1449_v35 = vrot.slane %v1441_v30, %v5406_v40  ;;  %v1456_v54 = vrot.slane %v1442_v41, %v5406_v40 }
 0x46d   : > { %v1497_v42 = vshrl.u32 %v1449_v35, 16  ;;  %v1457_v45 = vcombine.high %v1449_v35, %v5249_v36  ;;  %v1513_v61 = vshrl.u32 %v1456_v54, 16 }
 0x46f   : > { %v1505_v53 = vshrl.u32 %v1457_v45, 16 }
 0x490   : > { %v1252_v16 = vpop.xlane.xlu1 %1251 }
 0x491   : > { %v1256_v5 = vsub.f32 %v5513_v62, %v1252_v16  ;;  %v1268_v62 = vsel %vm1051_vm3, %v5134_v12, 0.0 }
 0x493   : > { %v1263_v0 = vmul.f32 1.442695, %v1256_v5 }
 0x495   : > { %5137 = vpow2.f32 %v1263_v0 }
 0x496   : > { %v1353_v23 = vpop.trf.xlu1 }
 0x49a   : > { %v1385_v27 = vpop.trf.xlu1 }
 0x49b   : > { %v1459_v29 = vcombine.low %v1321_v7, %v1385_v27  ;;  %v1458_v7 = vcombine.high %v1456_v54, %v5249_v36 }
 0x49d   : > { %v1466_v33 = vrot.slane %v1459_v29, %v5399_v28  ;;  %v1521_v13 = vshrl.u32 %v1458_v7, 16 }
 0x49e   : > { %v1417_v31 = vpop.trf.xlu1 }
 0x49f   : > { %v1467_v32 = vcombine.low %v1353_v23, %v1417_v31  ;;  %v5138_v18 = vpop.eup %5137 }
 0x4a0   : > { %v1274_v3 = vsel %vm1051_vm3, %v5138_v18, 0.0 }
 0x4a1   : > { %v1474_v34 = vrot.slane %v1467_v32, %v5399_v28 }
 0x4a3   : > { %v1475_v37 = vcombine.low %v1466_v33, %v1474_v34  ;;  %v1476_v38 = vcombine.high %v1466_v33, %v1474_v34 }
 0x4a5   : > { %v1483_v39 = vrot.slane %v1475_v37, %v5406_v40  ;;  %v1490_v50 = vrot.slane %v1476_v38, %v5406_v40 }
 0x4a7   : > { %v1495_v43 = vpack.i.b16 %v1483_v39, %v1449_v35  ;;  %v1498_v44 = vshrl.u32 %v1483_v39, 16  ;;  %v1491_v46 = vcombine.high %v1483_v39, %v5249_v36  ;;  %v1514_v58 = vshrl.u32 %v1490_v50, 16 }
 0x4a8   : > { %v1511_v60 = vpack.i.b16 %v1490_v50, %v1456_v54  ;;  %v1492_v4 = vcombine.high %v1490_v50, %v5249_v36 }
 0x4a9   : > { %1525 = vxpose.xlu0.c.b16.start.end [1/1] (short) (narrow) %v1495_v43, 16  ;;  %v1499_v48 = vpack.i.b16 %v1498_v44, %v1497_v42  ;;  %v1506_v49 = vshrl.u32 %v1491_v46, 16  ;;  %v1503_v52 = vpack.i.b16 %v1491_v46, %v1457_v45  ;;  %v1515_v24 = vpack.i.b16 %v1514_v58, %v1513_v61 }
 0x4aa   : > { %v1522_v8 = vshrl.u32 %v1492_v4, 16  ;;  %v1519_v11 = vpack.i.b16 %v1492_v4, %v1458_v7  ;;  %v5114_v4 = vld [vmem:[%s6027_s2 + $0x14] ss:$8 sps:$4 sm:$0xff]  }
 0x4ab   : > { %1541 = vxpose.xlu1.c.b16.start.end [1/1] (short) (narrow) %v1499_v48, 16  ;;  %v1507_v57 = vpack.i.b16 %v1506_v49, %v1505_v53 }
 0x4ac   : > { %v1523_v15 = vpack.i.b16 %v1522_v8, %v1521_v13 }
 0x4ad   : > { %1557 = vxpose.xlu0.c.b16.start.end [1/1] (short) (narrow) %v1503_v52, 16 }
 0x4af   : > { %1573 = vxpose.xlu1.c.b16.start.end [1/1] (short) (narrow) %v1507_v57, 16 }
 0x4b1   : > { %1589 = vxpose.xlu0.c.b16.start.end [1/1] (short) (narrow) %v1511_v60, 16 }
 0x4b3   : > { %1605 = vxpose.xlu1.c.b16.start.end [1/1] (short) (narrow) %v1515_v24, 16 }
 0x4be   : > { %1266 = vadd.xlane.f32.xlu0 %v1265_v20 }
 0x4c0   : > { %1269 = vadd.xlane.f32.xlu1 %v1268_v62 }
 0x4c2   : > { %1272 = vadd.xlane.f32.xlu0 %v1271_v19  ;;  %v5111_v19 = vld [vmem:[%s6027_s2 + $0x4] ss:$8 sps:$4 sm:$0xff]  }
 0x4c4   : > { %1275 = vadd.xlane.f32.xlu1 %v1274_v3 }
 0x4ef   : > { %1621 = vxpose.xlu0.c.b16.start.end [1/1] (short) (narrow) %v1519_v11, 16 }
 0x4f1   : > { %1637 = vxpose.xlu1.c.b16.start.end [1/1] (short) (narrow) %v1523_v15, 16 }
 0x50f   : > { %v1533_v16 = vpop.trf.xlu0 }
 0x511   : > { %v1549_v17 = vpop.trf.xlu1 }
 0x513   : > { %v1565_v21 = vpop.trf.xlu0 }
 0x515   : > { %v1581_v22 = vpop.trf.xlu1 }
 0x517   : > { %v1597_v23 = vpop.trf.xlu0 }
 0x518   : > { %v1653_v31 = vcombine.low %v1533_v16, %v1597_v23 }
 0x519   : > { %v1613_v25 = vpop.trf.xlu1 }
 0x51a   : > { %v1678_v34 = vcombine.low %v1549_v17, %v1613_v25  ;;  %v1660_v41 = vrot.slane %v1653_v31, %v5399_v28 }
 0x51c   : > { %v1685_v47 = vrot.slane %v1678_v34, %v5399_v28 }
 0x54b   : > { %v1267_v26 = vpop.xlane.xlu0 %1266 }
 0x54c   : > { %5139 = vrcp.f32 %v1267_v26 }
 0x54d   : > { %v1270_v27 = vpop.xlane.xlu1 %1269 }
 0x54e   : > { %5141 = vrcp.f32 %v1270_v27 }
 0x54f   : > { %v1273_v29 = vpop.xlane.xlu0 %1272 }
 0x550   : > { %5143 = vrcp.f32 %v1273_v29 }
 0x551   : > { %v1276_v30 = vpop.xlane.xlu1 %1275 }
 0x552   : > { %5145 = vrcp.f32 %v1276_v30 }
 0x555   : > { %v1629_v32 = vpop.trf.xlu0 }
 0x556   : > { %v5140_v33 = vpop.eup %5139  ;;  %v1661_v35 = vcombine.low %v1565_v21, %v1629_v32  ;;  %v5173_v32 = vld [vmem:[%s6027_s2] ss:$8 sps:$4 sm:$0xff]  }
 0x557   : > { %v1645_v37 = vpop.trf.xlu1  ;;  %v1281_v38 = vmul.f32 %v5140_v33, %v5132_v14 }
 0x558   : > { %v5142_v39 = vpop.eup %5141  ;;  %v1668_v42 = vrot.slane %v1661_v35, %v5399_v28  ;;  %v1686_v43 = vcombine.low %v1581_v22, %v1645_v37 }
 0x559   : > { %v1285_v44 = vpack.c.bf16 %v1281_v38, %v1281_v38  ;;  %v1282_v45 = vmul.f32 %v5142_v39, %v5134_v12 }
 0x55a   : > { %v5144_v46 = vpop.eup %5143  ;;  %v1669_v48 = vcombine.low %v1660_v41, %v1668_v42  ;;  %v1693_v49 = vrot.slane %v1686_v43, %v5399_v28 }
 0x55b   : > { %v1719_v50 = vsel %vm1051_vm3, %v1285_v44, 0  ;;  %v1286_v51 = vpack.c.bf16 %v1282_v45, %v1282_v45  ;;  %v1283_v52 = vmul.f32 %v5144_v46, %v5136_v2 }
 0x55c   : > { %v5146_v53 = vpop.eup %5145  ;;  %v1676_v54 = vrot.slane %v1669_v48, %v5406_v40  ;;  %v1694_v55 = vcombine.low %v1685_v47, %v1693_v49  ;;  %4913 = vmatpush3.bf16.xpose.msra.mxu0 %v1719_v50 }
 0x55d   : > { %v1765_v56 = vsel %vm1051_vm3, %v1286_v51, 0  ;;  %4924 = vmatprep.subr.bf16.mxu0 %v5241_v1  ;;  %v1284_v57 = vmul.f32 %v5146_v53, %v5138_v18  ;;  %v1287_v59 = vpack.c.bf16 %v1283_v52, %v1283_v52 }
 0x55e   : > { %v1701_v58 = vrot.slane %v1694_v55, %v5406_v40  ;;  %4919 = vmatpush3.bf16.xpose.msra.mxu1 %v1765_v56  ;;  %v1706_v5 = vshrl.u32 %v1676_v54, 16  ;;  %v1677_v12 = vcombine.high %v1676_v54, %v5249_v36 }
 0x55f   : > { %4930 = vmatprep.subr.bf16.mxu1 %v5241_v1  ;;  %v1288_v63 = vpack.c.bf16 %v1284_v57, %v1284_v57  ;;  %v1811_v14 = vsel %vm1051_vm3, %v1287_v59, 0 }
 0x560   : > { %v1705_v60 = vpack.i.b16 %v1701_v58, %v1676_v54  ;;  %v1707_v61 = vshrl.u32 %v1701_v58, 16  ;;  %v1702_v0 = vcombine.high %v1701_v58, %v5249_v36  ;;  %v1712_v62 = vshrl.u32 %v1677_v12, 16 }
 0x561   : > { %v1857_v20 = vsel %vm1051_vm3, %v1288_v63, 0 }
 0x562   : > { %v1708_v24 = vpack.i.b16 %v1707_v61, %v1706_v5  ;;  %v1713_v2 = vshrl.u32 %v1702_v0, 16  ;;  %v1711_v18 = vpack.i.b16 %v1702_v0, %v1677_v12 }
 0x563   : > { %4915 = vmatmul.mubr.msk.bf16.vlgmr.msra.gmra.mrb[8].mxu0 %vm1051_vm3, %v1705_v60 }
 0x564   : > { %4925 = vmatpush3.bf16.xpose.msra.mxu0 %v1811_v14  ;;  %4926 = vmatprep.mubr.msk.bf16.mxu0 %vm5242_vm0, %v5241_v1  ;;  %v1714_v3 = vpack.i.b16 %v1713_v2, %v1712_v62 }
 0x565   : > { %4921 = vmatmul.mubr.msk.bf16.vlgmr.msra.gmra.mrb[12].mxu1 %vm1051_vm3, %v1708_v24  ;;  %4936 = vmatprep.subr.bf16.mxu0 %v5241_v1 }
 0x566   : > { %4931 = vmatpush3.bf16.xpose.msra.mxu1 %v1857_v20  ;;  %4932 = vmatprep.mubr.msk.bf16.mxu1 %vm5242_vm0, %v5241_v1 }
 0x567   : > { %4944 = vmatprep.subr.bf16.mxu1 %v5241_v1 }
 0x56b   : > { %4927 = vmatmul.mubr.msk.bf16.vlgmr.msra.gmra.mrb[12].mxu0 %vm1051_vm3, %v1711_v18 }
 0x56c   : > { %4940 = vmatprep.mubr.msk.bf16.mxu0 %vm5242_vm0, %v5241_v1 }
 0x56d   : > { %4933 = vmatmul.mubr.msk.bf16.vlgmr.msra.gmra.mrb[16].mxu1 %vm1051_vm3, %v1714_v3 }
 0x56e   : > { %4945 = vmatpush3.bf16.msra.mxu1 %v5111_v19  ;;  %4948 = vmatprep.mubr.msk.bf16.mxu1 %vm5242_vm0, %v5241_v1 }
 0x56f   : > { %4946 = vmatprep.subr.bf16.mxu1 %v5241_v1 }
 0x572   : > { %4947 = vmatpush3.bf16.msra.mxu1 %v5114_v4 }
 0x573   : > { %4964 = vmatprep.subr.bf16.mxu1 %v5241_v1 }
 0x636   : > { %v1755_v7 = vpop.f32.mrb[8].mxu0 }
 0x637   : > { %1899 = vxpose.xlu0.b32.start.end [1/1] (short) (narrow) %v1755_v7, 8  ;;  %v4916_v8 = vpop.f32.mrb[9].mxu0 }
 0x638   : > { %v1758_v11 = vpop.f32.mrb[10].mxu0  ;;  %v1801_v13 = vpop.f32.mrb[12].mxu1  ;;  %v5174_v8 = vld [vmem:[%s6027_s2 + $0x10] ss:$8 sps:$4 sm:$0xff]  }
 0x639   : > { %1931 = vxpose.xlu1.b32.start.end [1/1] (short) (narrow) %v1801_v13, 8  ;;  %v4917_v15 = vpop.f32.mrb[11].mxu0  ;;  %v4922_v16 = vpop.f32.mrb[13].mxu1 }
 0x63a   : > { %v1804_v17 = vpop.f32.mrb[14].mxu1 }
 0x63b   : > { %v4923_v21 = vpop.f32.mrb[15].mxu1 }
 0x63e   : > { %v1847_v22 = vpop.f32.mrb[12].mxu0 }
 0x63f   : > { %1963 = vxpose.xlu0.b32.start.end [1/1] (short) (narrow) %v1847_v22, 8  ;;  %v4928_v23 = vpop.f32.mrb[13].mxu0 }
 0x640   : > { %v1850_v25 = vpop.f32.mrb[14].mxu0  ;;  %v1893_v26 = vpop.f32.mrb[16].mxu1 }
 0x641   : > { %v4929_v27 = vpop.f32.mrb[15].mxu0  ;;  %v4934_v29 = vpop.f32.mrb[17].mxu1  ;;  %v2183_v25 = vsub.s32 1, %v5368_v9 }
 0x642   : > { %v1896_v30 = vpop.f32.mrb[18].mxu1 }
 0x643   : > { %v4935_v31 = vpop.f32.mrb[19].mxu1  ;;  %1995 = vxpose.xlu0.b32.start.end [1/1] (short) (narrow) %v1893_v26, 8  ;;  %v5615_v26 = vld [vmem:[%s6029_s4] sm:$0xff] }
 0x644   : > { %v2184_v27 = vrot.slane %v5615_v26, %v2183_v25 }
 0x657   : > { %2185 = vrot.lane.b32.xlu1 %v5173_v32, %s5251_s18 }
 0x6b7   : > { %v1915_v33 = vpop.trf.xlu0 }
 0x6b9   : > { %v1947_v35 = vpop.trf.xlu1 }
 0x6bf   : > { %v1979_v34 = vpop.trf.xlu0 }
 0x6c0   : > { %v2027_v37 = vcombine.low %v1915_v33, %v1979_v34  ;;  %v2028_v38 = vcombine.high %v1915_v33, %v1979_v34 }
 0x6c2   : > { %v2035_v43 = vrot.slane %v2027_v37, %v5399_v28  ;;  %v2042_v44 = vrot.slane %v2028_v38, %v5399_v28 }
 0x6c3   : > { %v2011_v39 = vpop.trf.xlu0 }
 0x6c4   : > { %v2043_v41 = vcombine.low %v1947_v35, %v2011_v39  ;;  %v2044_v42 = vcombine.high %v1947_v35, %v2011_v39 }
 0x6c6   : > { %v2051_v45 = vrot.slane %v2043_v41, %v5399_v28  ;;  %v2058_v46 = vrot.slane %v2044_v42, %v5399_v28 }
 0x6c8   : > { %v2059_v47 = vcombine.low %v2035_v43, %v2051_v45  ;;  %v2060_v48 = vcombine.high %v2035_v43, %v2051_v45  ;;  %v2075_v49 = vcombine.low %v2042_v44, %v2058_v46  ;;  %v2076_v50 = vcombine.high %v2042_v44, %v2058_v46  ;;  %v5115_v43 = vld [vmem:[%s6028_s3] sm:$0xff]   ;;  %v5116_v44 = vld [vmem:[%s6028_s3 + $0x8] sm:$0xff]  }
 0x6c9   : > { %v2186_v51 = vpop.permute.xlu1 %2185 }
 0x6ca   : > { %v2067_v52 = vrot.slane %v2059_v47, %v5406_v40  ;;  %v2074_v53 = vrot.slane %v2060_v48, %v5406_v40  ;;  %v2083_v54 = vrot.slane %v2075_v49, %v5406_v40  ;;  %v2090_v55 = vrot.slane %v2076_v50, %v5406_v40  ;;  %4937 = vmatpush3.bf16.msra.mxu0 %v2186_v51 }
 0x6cb   : > { %4938 = vmatprep.subr.bf16.mxu0 %v5241_v1  ;;  %v2251_v47 = vsub.s32 2, %v5368_v9  ;;  %v2256_v48 = vsub.s32 3, %v5368_v9 }
 0x6cc   : > { %v2095_v56 = vcombine.low %v2067_v52, %v2074_v53  ;;  %v4760_v57 = vcombine.high %v2067_v52, %v2074_v53  ;;  %v2111_v58 = vcombine.low %v2083_v54, %v2090_v55  ;;  %v4761_v59 = vcombine.high %v2083_v54, %v2090_v55 }
 0x6cd   : > { %v2252_v49 = vrot.slane %v5615_v26, %v2251_v47  ;;  %v2257_v52 = vrot.slane %v5615_v26, %v2256_v48 }
 0x6ce   : > { %v2102_v5 = vrot.slane %v2095_v56, %v5399_v28  ;;  %v2110_v60 = vrot.slane %v4760_v57, %v5399_v28  ;;  %v2118_v61 = vrot.slane %v2111_v58, %v5399_v28  ;;  %v2126_v63 = vrot.slane %v4761_v59, %v5399_v28  ;;  %v5117_v56 = vld [vmem:[%s6028_s3 + $0x10] sm:$0xff]   ;;  %v5118_v57 = vld [vmem:[%s6028_s3 + $0x18] sm:$0xff]  }
 0x6cf   : > { %v2262_v58 = vsub.s32 4, %v5368_v9 }
 0x6d0   : > { %v2128_v24 = vcombine.high %v2102_v5, %v2110_v60  ;;  %v2144_v0 = vcombine.high %v2118_v61, %v2126_v63  ;;  %v2127_v14 = vcombine.low %v2102_v5, %v2110_v60  ;;  %v2143_v12 = vcombine.low %v2118_v61, %v2126_v63 }
 0x6d1   : > { %v2263_v59 = vrot.slane %v5615_v26, %v2262_v58 }
 0x6d2   : > { %v2142_v20 = vrot.slane %v2128_v24, %v5406_v40  ;;  %v2158_v2 = vrot.slane %v2144_v0, %v5406_v40  ;;  %v2135_v62 = vrot.slane %v2127_v14, %v5406_v40  ;;  %v2151_v18 = vrot.slane %v2143_v12, %v5406_v40 }
 0x6d3   : > { %v2327_v12 = vsub.s32 5, %v5368_v9 }
 0x6d4   : > { %v2161_v19 = vcombine.low %v2142_v20, %v2158_v2  ;;  %v2160_v3 = vcombine.high %v2135_v62, %v2151_v18  ;;  %v2159_v4 = vcombine.low %v2135_v62, %v2151_v18  ;;  %v2162_v7 = vcombine.high %v2142_v20, %v2158_v2 }
 0x6d5   : > { %v2328_v20 = vrot.slane %v5615_v26, %v2327_v12 }
 0x6d6   : > { %2168 = vrot.lane.b32.xlu1 %v2161_v19, %s5252_s19  ;;  %2164 = vrot.lane.b32.xlu0 %v2160_v3, %s5253_s20 }
 0x6da   : > { %2172 = vrot.lane.b32.xlu1 %v2162_v7, %s5254_s26 }
 0x6de   : > { %2187 = vrot.lane.b32.xlu1 %v5174_v8, %s5251_s18 }
 0x748   : > { %v2169_v11 = vpop.permute.xlu1 %2168  ;;  %v2165_v13 = vpop.permute.xlu0 %2164 }
 0x749   : > { %v2175_v15 = vsel %vm1051_vm3, %v2159_v4, %v2165_v13 }
 0x74a   : > { %v2177_v17 = vsel %vm2176_vm4, %v2175_v15, %v2169_v11 }
 0x74c   : > { %v2173_v16 = vpop.permute.xlu1 %2172 }
 0x74d   : > { %v2179_v21 = vsel %vm2178_vm5, %v2177_v17, %v2173_v16  ;;  %v5666_v17 = vld [vmem:[%s6027_s2 + $0x20] ss:$8 sps:$4 sm:$0xff]  }
 0x74e   : > { %v2180_v23 = vpack.c.bf16 %v2179_v21, %v2179_v21  ;;  %v5672_v21 = vld [vmem:[%s6027_s2 + $0x30] ss:$8 sps:$4 sm:$0xff]  }
 0x750   : > { %v2188_v22 = vpop.permute.xlu1 %2187 }
 0x751   : > { %4939 = vmatpush3.bf16.msra.mxu0 %v2188_v22 }
 0x752   : > { %4952 = vmatprep.subr.bf16.mxu0 %v5241_v1 }
 0x754   : > { %4941 = vmatmul.mubr.msk.bf16.vlgmr.msra.gmra.mrb[16].mxu0 %vm273_vm1, %v2180_v23 }
 0x755   : > { %4960 = vmatprep.mubr.msk.bf16.mxu0 %vm5242_vm0, %v5241_v1  ;;  %4953 = vmatpush3.bf16.msra.mxu0 %v5115_v43 }
 0x756   : > { %4954 = vmatprep.subr.bf16.mxu0 %v5241_v1 }
 0x759   : > { %4955 = vmatpush3.bf16.msra.mxu0 %v5116_v44 }
 0x75a   : > { %4956 = vmatprep.subr.bf16.mxu0 %v5241_v1 }
 0x75d   : > { %4957 = vmatpush3.bf16.msra.mxu0 %v5117_v56 }
 0x75e   : > { %4958 = vmatprep.subr.bf16.mxu0 %v5241_v1 }
 0x761   : > { %4959 = vmatpush3.bf16.msra.mxu0 %v5118_v57 }
 0x762   : > { %4978 = vmatprep.subr.bf16.mxu0 %v5241_v1 }
 0x827   : > { %v2228_v29 = vpop.f32.mrb[16].mxu0 }
 0x828   : > { %v2229_v30 = vadd.f32 %v2228_v29, %v2184_v27  ;;  %v4942_v31 = vpop.f32.mrb[17].mxu0  ;;  %v2413_v29 = vsub.s32 6, %v5368_v9 }
 0x829   : > { %v2231_v32 = vpop.f32.mrb[18].mxu0 }
 0x82a   : > { %v4943_v33 = vpop.f32.mrb[19].mxu0  ;;  %v2234_v34 = vadd.f32 %v2229_v30, %v5361_v6  ;;  %v2418_v30 = vsub.s32 7, %v5368_v9  ;;  %v2414_v31 = vrot.slane %v5615_v26, %v2413_v29  ;;  %v5130_v9 = vld [vmem:[%s6030_s5 + $0x8] sm:$0xff]  }
 0x82c   : > { %v2235_v35 = vsel %vm273_vm1, %v2234_v34, 0.0 }
 0x82d   : > { %2236 = vadd.xlane.f32.xlu0 %v2235_v35 }
 0x8ba   : > { %v2237_v37 = vpop.xlane.xlu0 %2236 }
 0x8bb   : > { %v2239_v38 = vmul.f32 0.03125, %v2237_v37 }
 0x8bd   : > { %v2240_v39 = vsub.f32 %v2234_v34, %v2239_v38  ;;  %v2419_v34 = vrot.slane %v5615_v26, %v2418_v30 }
 0x8bf   : > { %v2241_v41 = vmul.f32 %v2240_v39, %v2240_v39 }
 0x8c1   : > { %v2242_v42 = vsel %vm273_vm1, %v2241_v41, 0.0 }
 0x8c2   : > { %2243 = vadd.xlane.f32.xlu1 %v2242_v42 }
 0x94f   : > { %v2244_v6 = vpop.xlane.xlu1 %2243 }
 0x950   : > { %v2245_v45 = vmul.f32 0.03125, %v2244_v6 }
 0x952   : > { %v2246_v46 = vadd.f32 1e-05, %v2245_v45 }
 0x954   : > { %5147 = vrsqrt.f32 %v2246_v46 }
 0x95e   : > { %v5148_v50 = vpop.eup %5147 }
 0x95f   : > { %v2248_v51 = vmul.f32 %v5148_v50, %v2240_v39  ;;  %v5695_v39 = vld [vmem:[%s6029_s4 + $0x8] sm:$0xff] }
 0x960   : > { %v2432_v26 = vrot.slane %v5695_v39, %v259_v10 }
 0x961   : > { %v2253_v53 = vmul.f32 %v2252_v49, %v2248_v51 }
 0x963   : > { %v2258_v54 = vadd.f32 %v2257_v52, %v2253_v53 }
 0x965   : > { %v2259_v55 = vpack.c.bf16 %v2258_v54, %v2258_v54 }
 0x967   : > { %4949 = vmatmul.mubr.msk.bf16.vlgmr.msra.gmra.mrb[20].mxu1 %vm273_vm1, %v2259_v55 }
 0x968   : > { %4968 = vmatprep.mubr.msk.bf16.mxu1 %vm5242_vm0, %v5241_v1  ;;  %4965 = vmatpush3.bf16.msra.mxu1 %v5666_v17 }
 0x969   : > { %4966 = vmatprep.subr.bf16.mxu1 %v5241_v1 }
 0x96c   : > { %4967 = vmatpush3.bf16.msra.mxu1 %v5672_v21 }
 0x96d   : > { %4972 = vmatprep.subr.bf16.mxu1 %v5241_v1 }
 0xa3a   : > { %v2309_v5 = vpop.f32.mrb[20].mxu1 }
 0xa3b   : > { %v2310_v60 = vadd.f32 %v2309_v5, %v2263_v59  ;;  %v4950_v61 = vpop.f32.mrb[21].mxu1 }
 0xa3c   : > { %v2312_v63 = vpop.f32.mrb[22].mxu1 }
 0xa3d   : > { %v2315_v24 = vmax.f32 %v2310_v60, 0.0  ;;  %v4951_v0 = vpop.f32.mrb[23].mxu1 }
 0xa3f   : > { %v2324_v14 = vpack.c.bf16 %v2315_v24, %v2315_v24 }
 0xa41   : > { %4961 = vmatmul.mubr.msk.bf16.vlgmr.msra.gmra.mrb[20].mxu0 %vm2353_vm6, %v2324_v14 }
 0xa42   : > { %4980 = vmatprep.mubr.msk.bf16.mxu0 %vm5242_vm0, %v5241_v1 }
 0xb14   : > { %v2391_v2 = vpop.f32.mrb[20].mxu0 }
 0xb15   : > { %v2392_v62 = vadd.f32 %v2391_v2, %v2328_v20  ;;  %v4962_v18 = vpop.f32.mrb[21].mxu0 }
 0xb16   : > { %v2394_v19 = vpop.f32.mrb[22].mxu0 }
 0xb17   : > { %v4963_v3 = vpop.f32.mrb[23].mxu0  ;;  %v2397_v4 = vadd.f32 %v2392_v62, %v2258_v54 }
 0xb19   : > { %v2398_v7 = vsel %vm273_vm1, %v2397_v4, 0.0 }
 0xb1a   : > { %2399 = vadd.xlane.f32.xlu0 %v2398_v7 }
 0xba7   : > { %v2400_v8 = vpop.xlane.xlu0 %2399 }
 0xba8   : > { %v2401_v11 = vmul.f32 0.03125, %v2400_v8 }
 0xbaa   : > { %v2402_v13 = vsub.f32 %v2397_v4, %v2401_v11 }
 0xbac   : > { %v2403_v15 = vmul.f32 %v2402_v13, %v2402_v13 }
 0xbae   : > { %v2404_v16 = vsel %vm273_vm1, %v2403_v15, 0.0 }
 0xbaf   : > { %2405 = vadd.xlane.f32.xlu0 %v2404_v16 }
 0xc3c   : > { %v2406_v22 = vpop.xlane.xlu0 %2405 }
 0xc3d   : > { %v2407_v23 = vmul.f32 0.03125, %v2406_v22 }
 0xc3f   : > { %v2408_v27 = vadd.f32 1e-05, %v2407_v23 }
 0xc41   : > { %5149 = vrsqrt.f32 %v2408_v27 }
 0xc4b   : > { %v5150_v32 = vpop.eup %5149 }
 0xc4c   : > { %v2410_v33 = vmul.f32 %v5150_v32, %v2402_v13 }
 0xc4e   : > { %v2415_v35 = vmul.f32 %v2414_v31, %v2410_v33 }
 0xc50   : > { %v5685_v37 = vadd.f32 %v2419_v34, %v2415_v35 }
 0xc52   : > { %v2428_v38 = vpack.c.bf16 %v5685_v37, %v5685_v37 }
 0xc54   : > { %4969 = vmatmul.mubr.msk.bf16.vlgmr.msra.gmra.mrb[24].mxu1 %vm273_vm1, %v2428_v38 }
 0xc55   : > { %4974 = vmatprep.mubr.msk.bf16.mxu1 %vm5242_vm0, %v5241_v1 }
 0xd27   : > { %v2482_v41 = vpop.f32.mrb[24].mxu1 }
 0xd28   : > { %v5700_v42 = vadd.f32 %v2482_v41, %v2432_v26  ;;  %v4970_v43 = vpop.f32.mrb[25].mxu1 }
 0xd29   : > { %v2485_v44 = vpop.f32.mrb[26].mxu1 }
 0xd2a   : > { %2492 = vrot.lane.b32.xlu0 %v5700_v42, %s5246_s10  ;;  %2489 = vrot.lane.b32.xlu1 %v5700_v42, %s5244_s29  ;;  %v4971_v6 = vpop.f32.mrb[27].mxu1 }
 0xd2e   : > { %2495 = vrot.lane.b32.xlu1 %v5700_v42, %s5243_s28  ;;  %s5183_s28 = scalar_lea.vmem %s5182_s17, 32 }
 0xd32   : > { %2566 = vrot.lane.b32.xlu1 %v5700_v42, %s5245_s9 }
 0xd9c   : > { %v5710_v45 = vpop.permute.xlu0 %2492  ;;  %v5712_v10 = vpop.permute.xlu1 %2489 }
 0xd9d   : > { %2570 = vrot.lane.b32.xlu1 %v5710_v45, %s5245_s9  ;;  %2568 = vrot.lane.b32.xlu0 %v5712_v10, %s5245_s9 }
 0xda0   : > { %v5718_v46 = vpop.permute.xlu1 %2495 }
 0xda1   : > { %2572 = vrot.lane.b32.xlu0 %v5718_v46, %s5245_s9 }
 0xda4   : > { %v2567_v49 = vpop.permute.xlu1 %2566 }
 0xe0f   : > { %v2569_v50 = vpop.permute.xlu0 %2568  ;;  %v2571_v51 = vpop.permute.xlu1 %2570 }
 0xe10   : > { %v2578_v52 = vcombine.low %v2567_v49, %v2571_v51  ;;  %v2579_v53 = vcombine.high %v2567_v49, %v2571_v51 }
 0xe12   : > { %v2586_v57 = vrot.slane %v2578_v52, %v5399_v28  ;;  %v2593_v59 = vrot.slane %v2579_v53, %v5399_v28 }
 0xe13   : > { %v2573_v54 = vpop.permute.xlu0 %2572 }
 0xe14   : > { %v2594_v55 = vcombine.low %v2569_v50, %v2573_v54  ;;  %v2595_v56 = vcombine.high %v2569_v50, %v2573_v54 }
 0xe16   : > { %v2602_v5 = vrot.slane %v2594_v55, %v5399_v28  ;;  %v2609_v60 = vrot.slane %v2595_v56, %v5399_v28 }
 0xe18   : > { %v2610_v61 = vcombine.low %v2586_v57, %v2602_v5  ;;  %v2611_v63 = vcombine.high %v2586_v57, %v2602_v5  ;;  %v2626_v24 = vcombine.low %v2593_v59, %v2609_v60  ;;  %v2627_v20 = vcombine.high %v2593_v59, %v2609_v60 }
 0xe1a   : > { %v2625_v0 = vrot.slane %v2611_v63, %v5406_v40  ;;  %v2618_v14 = vrot.slane %v2610_v61, %v5406_v40  ;;  %v2634_v18 = vrot.slane %v2626_v24, %v5406_v40  ;;  %v2641_v3 = vrot.slane %v2627_v20, %v5406_v40 }
 0xe1c   : > { %v2736_v2 = vpack.c.bf16 %v2625_v0, %v2625_v0  ;;  %v2734_v62 = vpack.c.bf16 %v2618_v14, %v2618_v14  ;;  %v2643_v19 = vcombine.high %v2625_v0, %v5241_v1  ;;  %v2738_v4 = vpack.c.bf16 %v2634_v18, %v2634_v18 }
 0xe1d   : > { %v2644_v8 = vcombine.high %v2634_v18, %v5241_v1  ;;  %v2642_v11 = vcombine.high %v2618_v14, %v5241_v1  ;;  %v2645_v16 = vcombine.high %v2641_v3, %v5241_v1  ;;  %v2740_v23 = vpack.c.bf16 %v2641_v3, %v2641_v3 }
 0xe1e   : > { %2836 = vxpose.xlu0.c.b16.start.end [1/1] (short) (narrow) %v2736_v2, 16  ;;  %2804 = vxpose.xlu1.c.b16.start.end [1/1] (short) (narrow) %v2734_v62, 16  ;;  %v2737_v7 = vpack.c.bf16 %v2643_v19, %v2643_v19 }
 0xe1f   : > { %v2739_v13 = vpack.c.bf16 %v2644_v8, %v2644_v8  ;;  %v2735_v15 = vpack.c.bf16 %v2642_v11, %v2642_v11  ;;  %v2741_v22 = vpack.c.bf16 %v2645_v16, %v2645_v16 }
 0xe22   : > { %2868 = vxpose.xlu0.c.b16.start.end [1/1] (short) (narrow) %v2738_v4, 16  ;;  %2852 = vxpose.xlu1.c.b16.start.end [1/1] (short) (narrow) %v2737_v7, 16 }
 0xe26   : > { %2884 = vxpose.xlu1.c.b16.start.end [1/1] (short) (narrow) %v2739_v13, 16  ;;  %2820 = vxpose.xlu0.c.b16.start.end [1/1] (short) (narrow) %v2735_v15, 16 }
 0xe2a   : > { %2916 = vxpose.xlu1.c.b16.start.end [1/1] (short) (narrow) %v2741_v22, 16  ;;  %2900 = vxpose.xlu0.c.b16.start.end [1/1] (short) (narrow) %v2740_v23, 16 }
 0xe84   : > { %v2844_v27 = vpop.trf.xlu0  ;;  %v2812_v31 = vpop.trf.xlu1 }
 0xe88   : > { %v2876_v32 = vpop.trf.xlu0  ;;  %v2860_v33 = vpop.trf.xlu1 }
 0xe89   : > { %v2932_v38 = vcombine.low %v2812_v31, %v2876_v32  ;;  %v2515_v31 = vcombine.high %v5712_v10, %v5718_v46  ;;  %v2498_v32 = vcombine.low %v5700_v42, %v5710_v45 }
 0xe8b   : > { %v2939_v49 = vrot.slane %v2932_v38, %v5399_v28  ;;  %v2506_v38 = vrot.slane %v2498_v32, %v5399_v28 }
 0xe8c   : > { %v2892_v34 = vpop.trf.xlu1  ;;  %v2828_v35 = vpop.trf.xlu0 }
 0xe8d   : > { %v2966_v26 = vcombine.low %v2828_v35, %v2892_v34  ;;  %v2529_v35 = vrot.slane %v2515_v31, %v5399_v28 }
 0xe8f   : > { %v2973_v50 = vrot.slane %v2966_v26, %v5399_v28 }
 0xe90   : > { %v2924_v41 = vpop.trf.xlu1  ;;  %v2908_v43 = vpop.trf.xlu0 }
 0xe91   : > { %v2974_v44 = vcombine.low %v2860_v33, %v2924_v41  ;;  %v2940_v6 = vcombine.low %v2844_v27, %v2908_v43  ;;  %v2514_v27 = vcombine.low %v5712_v10, %v5718_v46  ;;  %v2499_v33 = vcombine.high %v5700_v42, %v5710_v45 }
 0xe93   : > { %v2981_v51 = vrot.slane %v2974_v44, %v5399_v28  ;;  %v2947_v52 = vrot.slane %v2940_v6, %v5399_v28  ;;  %v2522_v34 = vrot.slane %v2514_v27, %v5399_v28  ;;  %v2513_v26 = vrot.slane %v2499_v33, %v5399_v28 }
 0xe95   : > { %v2982_v53 = vcombine.low %v2973_v50, %v2981_v51  ;;  %v2983_v54 = vcombine.high %v2973_v50, %v2981_v51  ;;  %v2948_v55 = vcombine.low %v2939_v49, %v2947_v52  ;;  %v2949_v56 = vcombine.high %v2939_v49, %v2947_v52 }
 0xe96   : > { %v2530_v41 = vcombine.low %v2506_v38, %v2522_v34  ;;  %v2531_v43 = vcombine.high %v2506_v38, %v2522_v34  ;;  %v2546_v44 = vcombine.low %v2513_v26, %v2529_v35  ;;  %v2547_v6 = vcombine.high %v2513_v26, %v2529_v35 }
 0xe97   : > { %v2956_v57 = vrot.slane %v2948_v55, %v5406_v40  ;;  %v2990_v59 = vrot.slane %v2982_v53, %v5406_v40  ;;  %v2963_v5 = vrot.slane %v2949_v56, %v5406_v40  ;;  %v2997_v60 = vrot.slane %v2983_v54, %v5406_v40 }
 0xe98   : > { %v2554_v49 = vrot.slane %v2546_v44, %v5406_v40 }
 0xe99   : > { %v3002_v61 = vpack.i.b16 %v2990_v59, %v2956_v57  ;;  %v3004_v63 = vshrl.u32 %v2956_v57, 16  ;;  %v3005_v24 = vshrl.u32 %v2990_v59, 16  ;;  %v3020_v0 = vshrl.u32 %v2963_v5, 16 }
 0xe9a   : > { %v3021_v20 = vshrl.u32 %v2997_v60, 16  ;;  %v2964_v2 = vcombine.high %v2956_v57, %v5249_v36  ;;  %v2998_v62 = vcombine.high %v2990_v59, %v5249_v36  ;;  %v3018_v18 = vpack.i.b16 %v2997_v60, %v2963_v5 }
 0xe9b   : > { %3032 = vxpose.xlu0.c.b16.start.end [1/1] (short) (narrow) %v3002_v61, 16  ;;  %v3006_v14 = vpack.i.b16 %v3005_v24, %v3004_v63  ;;  %v2965_v19 = vcombine.high %v2963_v5, %v5249_v36  ;;  %v2999_v8 = vcombine.high %v2997_v60, %v5249_v36  ;;  %v2564_v53 = vcombine.high %v2554_v49, %v5241_v1 }
 0xe9c   : > { %v3022_v3 = vpack.i.b16 %v3021_v20, %v3020_v0  ;;  %v3012_v4 = vshrl.u32 %v2964_v2, 16  ;;  %v3013_v7 = vshrl.u32 %v2998_v62, 16  ;;  %v3010_v11 = vpack.i.b16 %v2998_v62, %v2964_v2 }
 0xe9d   : > { %3048 = vxpose.xlu1.c.b16.start.end [1/1] (short) (narrow) %v3006_v14, 16  ;;  %v3028_v15 = vshrl.u32 %v2965_v19, 16  ;;  %v3029_v16 = vshrl.u32 %v2999_v8, 16  ;;  %v3026_v22 = vpack.i.b16 %v2999_v8, %v2965_v19 }
 0xe9e   : > { %v3014_v13 = vpack.i.b16 %v3013_v7, %v3012_v4 }
 0xe9f   : > { %3096 = vxpose.xlu0.c.b16.start.end [1/1] (short) (narrow) %v3018_v18, 16  ;;  %v3030_v23 = vpack.i.b16 %v3029_v16, %v3028_v15 }
 0xea1   : > { %3112 = vxpose.xlu1.c.b16.start.end [1/1] (short) (narrow) %v3022_v3, 16 }
 0xea3   : > { %3064 = vxpose.xlu0.c.b16.start.end [1/1] (short) (narrow) %v3010_v11, 16 }
 0xea5   : > { %3080 = vxpose.xlu1.c.b16.start.end [1/1] (short) (narrow) %v3014_v13, 16 }
 0xea7   : > { %3128 = vxpose.xlu0.c.b16.start.end [1/1] (short) (narrow) %v3026_v22, 16 }
 0xea9   : > { %3144 = vxpose.xlu1.c.b16.start.end [1/1] (short) (narrow) %v3030_v23, 16 }
 0xead   : > { %2648 = vrot.lane.b32.xlu1 %v5712_v10, %s5250_s11  ;;  %v2538_v10 = vrot.slane %v2530_v41, %v5406_v40 }
 0xeaf   : > { %v2562_v51 = vcombine.high %v2538_v10, %v5241_v1  ;;  %v4779_v60 = vpack.c.bf16 %v2554_v49, %v2538_v10 }
 0xeb0   : > { %2646 = vrot.lane.b32.xlu0 %v5700_v42, %s5250_s11  ;;  %v2561_v42 = vrot.slane %v2547_v6, %v5406_v40 }
 0xeb1   : > { %2650 = vrot.lane.b32.xlu1 %v5710_v45, %s5250_s11  ;;  %v4781_v57 = vpack.c.bf16 %v2564_v53, %v2562_v51  ;;  %v2749_v18 = vrot.slane %v4779_v60, %v5399_v28 }
 0xeb2   : > { %v2565_v54 = vcombine.high %v2561_v42, %v5241_v1 }
 0xeb3   : > { %v2774_v0 = vrot.slane %v4781_v57, %v5399_v28 }
 0xeb4   : > { %2652 = vrot.lane.b32.xlu0 %v5718_v46, %s5250_s11  ;;  %v2545_v46 = vrot.slane %v2531_v43, %v5406_v40 }
 0xeb6   : > { %v2563_v52 = vcombine.high %v2545_v46, %v5241_v1  ;;  %v4780_v61 = vpack.c.bf16 %v2561_v42, %v2545_v46 }
 0xeb8   : > { %v4782_v59 = vpack.c.bf16 %v2565_v54, %v2563_v52  ;;  %v2757_v19 = vrot.slane %v4780_v61, %v5399_v28 }
 0xeba   : > { %v2782_v14 = vrot.slane %v4782_v59, %v5399_v28  ;;  %v2758_v22 = vcombine.low %v2749_v18, %v2757_v19 }
 0xebc   : > { %v2783_v11 = vcombine.low %v2774_v0, %v2782_v14  ;;  %v2765_v34 = vrot.slane %v2758_v22, %v5406_v40 }
 0xebe   : > { %v2790_v31 = vrot.slane %v2783_v11, %v5406_v40  ;;  %v2766_v57 = vcombine.high %v2765_v34, %v5249_v36 }
 0xec0   : > { %v2796_v43 = vshrl.u32 %v2790_v31, 16  ;;  %v2791_v54 = vcombine.high %v2790_v31, %v5249_v36 }
 0xec2   : > { %v2800_v61 = vpack.i.b16 %v2791_v54, %v2766_v57 }
 0xf01   : > { %v3040_v45 = vpop.trf.xlu0 }
 0xf03   : > { %v3056_v50 = vpop.trf.xlu1 }
 0xf05   : > { %v3104_v55 = vpop.trf.xlu0 }
 0xf06   : > { %v3160_v24 = vcombine.low %v3040_v45, %v3104_v55  ;;  %v2794_v45 = vpack.i.b16 %v2790_v31, %v2765_v34 }
 0xf07   : > { %v3120_v56 = vpop.trf.xlu1 }
 0xf08   : > { %v3185_v2 = vcombine.low %v3056_v50, %v3120_v56  ;;  %v3167_v4 = vrot.slane %v3160_v24, %v5399_v28  ;;  %v2795_v50 = vshrl.u32 %v2765_v34, 16 }
 0xf09   : > { %v3072_v5 = vpop.trf.xlu0 }
 0xf0a   : > { %v3192_v13 = vrot.slane %v3185_v2, %v5399_v28  ;;  %v2797_v53 = vpack.i.b16 %v2796_v43, %v2795_v50 }
 0xf0b   : > { %v3088_v63 = vpop.trf.xlu1 }
 0xf0d   : > { %v3136_v20 = vpop.trf.xlu0 }
 0xf0e   : > { %v3168_v62 = vcombine.low %v3072_v5, %v3136_v20  ;;  %v2802_v5 = vshrl.u32 %v2791_v54, 16 }
 0xf0f   : > { %v3152_v3 = vpop.trf.xlu1 }
 0xf10   : > { %v3175_v7 = vrot.slane %v3168_v62, %v5399_v28  ;;  %v3193_v8 = vcombine.low %v3088_v63, %v3152_v3  ;;  %v2801_v63 = vshrl.u32 %v2766_v57, 16 }
 0xf12   : > { %v3176_v15 = vcombine.low %v3167_v4, %v3175_v7  ;;  %v3200_v16 = vrot.slane %v3193_v8, %v5399_v28  ;;  %v2803_v14 = vpack.i.b16 %v2802_v5, %v2801_v63 }
 0xf14   : > { %v3183_v23 = vrot.slane %v3176_v15, %v5406_v40  ;;  %v3201_v27 = vcombine.low %v3192_v13, %v3200_v16 }
 0xf16   : > { %v3208_v32 = vrot.slane %v3201_v27, %v5406_v40  ;;  %v3184_v33 = vcombine.high %v3183_v23, %v5249_v36  ;;  %v3213_v38 = vshrl.u32 %v3183_v23, 16 }
 0xf18   : > { %v3212_v35 = vpack.i.b16 %v3208_v32, %v3183_v23  ;;  %v3214_v26 = vshrl.u32 %v3208_v32, 16  ;;  %v3209_v41 = vcombine.high %v3208_v32, %v5249_v36  ;;  %v3219_v44 = vshrl.u32 %v3184_v33, 16 }
 0xf1a   : > { %v3226_v6 = vsel %vm1055_vm2, %v3212_v35, 0  ;;  %v3215_v10 = vpack.i.b16 %v3214_v26, %v3213_v38  ;;  %v3218_v46 = vpack.i.b16 %v3209_v41, %v3184_v33  ;;  %v3220_v49 = vshrl.u32 %v3209_v41, 16 }
 0xf1b   : > { %4973 = vmatpush3.bf16.msra.mxu1 %v3226_v6 }
 0xf1c   : > { %v3272_v42 = vsel %vm1055_vm2, %v3215_v10, 0  ;;  %4984 = vmatprep.subr.bf16.mxu1 %v5241_v1  ;;  %v3221_v51 = vpack.i.b16 %v3220_v49, %v3219_v44  ;;  %v3318_v52 = vsel %vm1055_vm2, %v3218_v46, 0 }
 0xf1d   : > { %4979 = vmatpush3.bf16.msra.mxu0 %v3272_v42 }
 0xf1e   : > { %4975 = vmatmul.mubr.msk.bf16.vlgmr.msra.gmra.mrb[28].mxu1 %vm1051_vm3, %v2794_v45  ;;  %4990 = vmatprep.subr.bf16.mxu0 %v5241_v1  ;;  %v3364_v56 = vsel %vm1055_vm2, %v3221_v51, 0 }
 0xf1f   : > { %v2649_v55 = vpop.permute.xlu1 %2648  ;;  %4985 = vmatpush3.bf16.msra.mxu1 %v3318_v52  ;;  %4986 = vmatprep.mubr.msk.bf16.mxu1 %vm5242_vm0, %v5241_v1 }
 0xf20   : > { %4981 = vmatmul.mubr.msk.bf16.vlgmr.msra.gmra.mrb[24].mxu0 %vm1051_vm3, %v2797_v53  ;;  %4996 = vmatprep.subr.bf16.mxu1 %v5241_v1 }
 0xf21   : > { %4991 = vmatpush3.bf16.msra.mxu0 %v3364_v56  ;;  %4992 = vmatprep.mubr.msk.bf16.mxu0 %vm5242_vm0, %v5241_v1 }
 0xf22   : > { %v2647_v59 = vpop.permute.xlu0 %2646  ;;  %5002 = vmatprep.subr.bf16.mxu0 %v5241_v1 }
 0xf23   : > { %v2651_v60 = vpop.permute.xlu1 %2650 }
 0xf24   : > { %v2659_v24 = vcombine.high %v2647_v59, %v2651_v60  ;;  %v2658_v6 = vcombine.low %v2647_v59, %v2651_v60 }
 0xf26   : > { %4987 = vmatmul.mubr.msk.bf16.vlgmr.msra.gmra.mrb[32].mxu1 %vm1051_vm3, %v2800_v61  ;;  %v2653_v0 = vpop.permute.xlu0 %2652  ;;  %v2673_v2 = vrot.slane %v2659_v24, %v5399_v28  ;;  %v2666_v46 = vrot.slane %v2658_v6, %v5399_v28 }
 0xf27   : > { %v2675_v20 = vcombine.high %v2649_v55, %v2653_v0  ;;  %4998 = vmatprep.mubr.msk.bf16.mxu1 %vm5242_vm0, %v5241_v1  ;;  %v2674_v44 = vcombine.low %v2649_v55, %v2653_v0 }
 0xf28   : > { %4993 = vmatmul.mubr.msk.bf16.vlgmr.msra.gmra.mrb[28].mxu0 %vm1051_vm3, %v2803_v14 }
 0xf29   : > { %v2689_v62 = vrot.slane %v2675_v20, %v5399_v28  ;;  %5004 = vmatprep.mubr.msk.bf16.mxu0 %vm5242_vm0, %v5241_v1  ;;  %v2682_v10 = vrot.slane %v2674_v44, %v5399_v28 }
 0xf2b   : > { %v2706_v18 = vcombine.low %v2673_v2, %v2689_v62  ;;  %v2707_v19 = vcombine.high %v2673_v2, %v2689_v62  ;;  %v2690_v49 = vcombine.low %v2666_v46, %v2682_v10  ;;  %v2691_v56 = vcombine.high %v2666_v46, %v2682_v10 }
 0xf2d   : > { %v2698_v42 = vrot.slane %v2690_v49, %v5406_v40  ;;  %v2705_v57 = vrot.slane %v2691_v56, %v5406_v40  ;;  %v2714_v5 = vrot.slane %v2706_v18, %v5406_v40  ;;  %v2721_v24 = vrot.slane %v2707_v19, %v5406_v40 }
 0xf2f   : > { %v2722_v45 = vcombine.high %v2698_v42, %v5241_v1  ;;  %v3458_v51 = vpack.c.bf16 %v2698_v42, %v2698_v42  ;;  %v2723_v59 = vcombine.high %v2705_v57, %v5241_v1  ;;  %v3460_v60 = vpack.c.bf16 %v2705_v57, %v2705_v57 }
 0xf30   : > { %v2724_v63 = vcombine.high %v2714_v5, %v5241_v1  ;;  %v3462_v0 = vpack.c.bf16 %v2714_v5, %v2714_v5  ;;  %v2725_v20 = vcombine.high %v2721_v24, %v5241_v1  ;;  %v3464_v2 = vpack.c.bf16 %v2721_v24, %v2721_v24 }
 0xf31   : > { %v3459_v50 = vpack.c.bf16 %v2722_v45, %v2722_v45  ;;  %v3461_v61 = vpack.c.bf16 %v2723_v59, %v2723_v59 }
 0xf32   : > { %v3463_v14 = vpack.c.bf16 %v2724_v63, %v2724_v63  ;;  %v3465_v62 = vpack.c.bf16 %v2725_v20, %v2725_v20 }
 0xff1   : > { %v3262_v3 = vpop.f32.mrb[28].mxu1 }
 0xff2   : > { %v5812_v4 = vmul.f32 0.35355338, %v3262_v3  ;;  %v4976_v7 = vpop.f32.mrb[29].mxu1 }
 0xff3   : > { %v3265_v8 = vpop.f32.mrb[30].mxu1  ;;  %v3308_v11 = vpop.f32.mrb[24].mxu0 }
 0xff4   : > { %v5814_v13 = vmul.f32 0.35355338, %v3308_v11  ;;  %v4977_v15 = vpop.f32.mrb[31].mxu1  ;;  %v4982_v16 = vpop.f32.mrb[25].mxu0  ;;  %v3410_v22 = vsel %vm1051_vm3, %v5812_v4, -inf }
 0xff5   : > { %3411 = vmax.xlane.f32.xlu0 %v3410_v22  ;;  %v3311_v23 = vpop.f32.mrb[26].mxu0 }
 0xff6   : > { %v4983_v27 = vpop.f32.mrb[27].mxu0  ;;  %v3413_v31 = vsel %vm1051_vm3, %v5814_v13, -inf }
 0xff7   : > { %3414 = vmax.xlane.f32.xlu1 %v3413_v31 }
 0xff9   : > { %v3354_v32 = vpop.f32.mrb[32].mxu1 }
 0xffa   : > { %v4988_v33 = vpop.f32.mrb[33].mxu1  ;;  %v5824_v52 = vmul.f32 0.35355338, %v3354_v32 }
 0xffb   : > { %v3357_v34 = vpop.f32.mrb[34].mxu1  ;;  %v3400_v35 = vpop.f32.mrb[28].mxu0 }
 0xffc   : > { %v4989_v38 = vpop.f32.mrb[35].mxu1  ;;  %v4994_v26 = vpop.f32.mrb[29].mxu0  ;;  %v5826_v53 = vmul.f32 0.35355338, %v3400_v35  ;;  %v3416_v54 = vsel %vm1051_vm3, %v5824_v52, -inf }
 0xffd   : > { %v3403_v41 = vpop.f32.mrb[30].mxu0 }
 0xffe   : > { %v4995_v43 = vpop.f32.mrb[31].mxu0  ;;  %v3419_v55 = vsel %vm1051_vm3, %v5826_v53, -inf }
0x1022   : > { %3482 = vxpose.xlu0.c.b16.start.end [1/1] (short) (narrow) %v3459_v50, 16 }
0x1024   : > { %3466 = vxpose.xlu1.c.b16.start.end [1/1] (short) (narrow) %v3458_v51, 16 }
0x102f   : > { %3417 = vmax.xlane.f32.xlu0 %v3416_v54 }
0x1031   : > { %3420 = vmax.xlane.f32.xlu1 %v3419_v55 }
0x105c   : > { %3498 = vxpose.xlu0.c.b16.start.end [1/1] (short) (narrow) %v3460_v60, 16 }
0x105e   : > { %3514 = vxpose.xlu1.c.b16.start.end [1/1] (short) (narrow) %v3461_v61, 16 }
0x1060   : > { %3530 = vxpose.xlu0.c.b16.start.end [1/1] (short) (narrow) %v3462_v0, 16 }
0x1062   : > { %3546 = vxpose.xlu1.c.b16.start.end [1/1] (short) (narrow) %v3463_v14, 16 }
0x1064   : > { %3562 = vxpose.xlu0.c.b16.start.end [1/1] (short) (narrow) %v3464_v2, 16 }
0x1066   : > { %3578 = vxpose.xlu1.c.b16.start.end [1/1] (short) (narrow) %v3465_v62, 16 }
0x1082   : > { %v3412_v3 = vpop.xlane.xlu0 %3411 }
0x1083   : > { %v3422_v56 = vsub.f32 %v5812_v4, %v3412_v3 }
0x1084   : > { %v3415_v18 = vpop.xlane.xlu1 %3414 }
0x1085   : > { %v3423_v60 = vsub.f32 %v5814_v13, %v3415_v18  ;;  %v3426_v0 = vmul.f32 1.442695, %v3422_v56 }
0x1087   : > { %v3428_v62 = vmul.f32 1.442695, %v3423_v60  ;;  %5151 = vpow2.f32 %v3426_v0 }
0x1088   : > { %v3490_v7 = vpop.trf.xlu0 }
0x1089   : > { %5153 = vpow2.f32 %v3428_v62 }
0x108a   : > { %v3474_v8 = vpop.trf.xlu1 }
0x10bc   : > { %v3418_v11 = vpop.xlane.xlu0 %3417 }
0x10bd   : > { %v3424_v14 = vsub.f32 %v5824_v52, %v3418_v11 }
0x10be   : > { %v3421_v15 = vpop.xlane.xlu1 %3420 }
0x10bf   : > { %v3425_v4 = vsub.f32 %v5826_v53, %v3421_v15 }
0x10c1   : > { %v3432_v18 = vmul.f32 1.442695, %v3425_v4 }
0x10c2   : > { %v3506_v16 = vpop.trf.xlu0 }
0x10c4   : > { %v3522_v22 = vpop.trf.xlu1 }
0x10c6   : > { %v3538_v19 = vpop.trf.xlu0 }
0x10c7   : > { %v3594_v27 = vcombine.low %v3474_v8, %v3538_v19  ;;  %v3430_v8 = vmul.f32 1.442695, %v3424_v14 }
0x10c8   : > { %v3554_v23 = vpop.trf.xlu1 }
0x10c9   : > { %v3628_v32 = vcombine.low %v3490_v7, %v3554_v23  ;;  %v3601_v35 = vrot.slane %v3594_v27, %v5399_v28  ;;  %5155 = vpow2.f32 %v3430_v8 }
0x10ca   : > { %v3570_v31 = vpop.trf.xlu0  ;;  %5157 = vpow2.f32 %v3432_v18 }
0x10cb   : > { %v3602_v33 = vcombine.low %v3506_v16, %v3570_v31  ;;  %v3635_v41 = vrot.slane %v3628_v32, %v5399_v28  ;;  %v5152_v16 = vpop.eup %5151 }
0x10cc   : > { %v3586_v34 = vpop.trf.xlu1  ;;  %v5154_v52 = vpop.eup %5153  ;;  %v3434_v11 = vsel %vm1051_vm3, %v5152_v16, 0.0 }
0x10cd   : > { %v3609_v38 = vrot.slane %v3602_v33, %v5399_v28  ;;  %v3636_v26 = vcombine.low %v3522_v22, %v3586_v34  ;;  %v3437_v53 = vsel %vm1051_vm3, %v5154_v52, 0.0 }
0x10cf   : > { %v3610_v43 = vcombine.low %v3601_v35, %v3609_v38  ;;  %v3643_v44 = vrot.slane %v3636_v26, %v5399_v28  ;;  %v3611_v42 = vcombine.high %v3601_v35, %v3609_v38 }
0x10d1   : > { %v3618_v6 = vrot.slane %v3610_v43, %v5406_v40  ;;  %v3644_v10 = vcombine.low %v3635_v41, %v3643_v44  ;;  %v3645_v46 = vcombine.high %v3635_v41, %v3643_v44  ;;  %v3625_v61 = vrot.slane %v3611_v42, %v5406_v40 }
0x10d3   : > { %v3652_v49 = vrot.slane %v3644_v10, %v5406_v40  ;;  %v3666_v45 = vshrl.u32 %v3618_v6, 16  ;;  %v3626_v54 = vcombine.high %v3618_v6, %v5249_v36  ;;  %v3659_v57 = vrot.slane %v3645_v46, %v5406_v40  ;;  %v5156_v22 = vpop.eup %5155 }
0x10d4   : > { %v3682_v7 = vshrl.u32 %v3625_v61, 16  ;;  %v5158_v15 = vpop.eup %5157  ;;  %v3440_v19 = vsel %vm1051_vm3, %v5156_v22, 0.0  ;;  %v3627_v31 = vcombine.high %v3625_v61, %v5249_v36 }
0x10d5   : > { %v3664_v50 = vpack.i.b16 %v3652_v49, %v3618_v6  ;;  %v3667_v51 = vshrl.u32 %v3652_v49, 16  ;;  %v3660_v55 = vcombine.high %v3652_v49, %v5249_v36  ;;  %v3674_v24 = vshrl.u32 %v3626_v54, 16 }
0x10d6   : > { %v3683_v2 = vshrl.u32 %v3659_v57, 16  ;;  %v3680_v3 = vpack.i.b16 %v3659_v57, %v3625_v61  ;;  %v3443_v23 = vsel %vm1051_vm3, %v5158_v15, 0.0  ;;  %v3661_v27 = vcombine.high %v3659_v57, %v5249_v36 }
0x10d7   : > { %3694 = vxpose.xlu0.c.b16.start.end [1/1] (short) (narrow) %v3664_v50, 16  ;;  %v3668_v59 = vpack.i.b16 %v3667_v51, %v3666_v45  ;;  %v3675_v5 = vshrl.u32 %v3660_v55, 16  ;;  %v3672_v63 = vpack.i.b16 %v3660_v55, %v3626_v54  ;;  %v3690_v34 = vshrl.u32 %v3627_v31, 16 }
0x10d8   : > { %v3684_v13 = vpack.i.b16 %v3683_v2, %v3682_v7  ;;  %v3691_v32 = vshrl.u32 %v3661_v27, 16  ;;  %v3688_v33 = vpack.i.b16 %v3661_v27, %v3627_v31 }
0x10d9   : > { %3710 = vxpose.xlu1.c.b16.start.end [1/1] (short) (narrow) %v3668_v59, 16  ;;  %v3676_v20 = vpack.i.b16 %v3675_v5, %v3674_v24 }
0x10da   : > { %v3692_v35 = vpack.i.b16 %v3691_v32, %v3690_v34 }
0x10db   : > { %3726 = vxpose.xlu0.c.b16.start.end [1/1] (short) (narrow) %v3672_v63, 16 }
0x10dd   : > { %3742 = vxpose.xlu1.c.b16.start.end [1/1] (short) (narrow) %v3676_v20, 16 }
0x10df   : > { %3758 = vxpose.xlu0.c.b16.start.end [1/1] (short) (narrow) %v3680_v3, 16 }
0x10e1   : > { %3774 = vxpose.xlu1.c.b16.start.end [1/1] (short) (narrow) %v3684_v13, 16 }
0x10ec   : > { %3435 = vadd.xlane.f32.xlu0 %v3434_v11 }
0x10ee   : > { %3438 = vadd.xlane.f32.xlu1 %v3437_v53 }
0x10f0   : > { %3441 = vadd.xlane.f32.xlu0 %v3440_v19 }
0x10f2   : > { %3444 = vadd.xlane.f32.xlu1 %v3443_v23 }
0x111d   : > { %3790 = vxpose.xlu0.c.b16.start.end [1/1] (short) (narrow) %v3688_v33, 16 }
0x111f   : > { %3806 = vxpose.xlu1.c.b16.start.end [1/1] (short) (narrow) %v3692_v35, 16 }
0x113d   : > { %v3702_v38 = vpop.trf.xlu0 }
0x113f   : > { %v3718_v26 = vpop.trf.xlu1 }
0x1141   : > { %v3734_v41 = vpop.trf.xlu0 }
0x1143   : > { %v3750_v43 = vpop.trf.xlu1 }
0x1145   : > { %v3766_v44 = vpop.trf.xlu0 }
0x1146   : > { %v3822_v45 = vcombine.low %v3702_v38, %v3766_v44 }
0x1147   : > { %v3782_v6 = vpop.trf.xlu1 }
0x1148   : > { %v3847_v54 = vcombine.low %v3718_v26, %v3782_v6  ;;  %v3829_v5 = vrot.slane %v3822_v45, %v5399_v28 }
0x114a   : > { %v3854_v14 = vrot.slane %v3847_v54, %v5399_v28 }
0x1179   : > { %v3436_v10 = vpop.xlane.xlu0 %3435 }
0x117a   : > { %5159 = vrcp.f32 %v3436_v10 }
0x117b   : > { %v3439_v46 = vpop.xlane.xlu1 %3438 }
0x117c   : > { %5161 = vrcp.f32 %v3439_v46 }
0x117d   : > { %v3442_v49 = vpop.xlane.xlu0 %3441 }
0x117e   : > { %5163 = vrcp.f32 %v3442_v49 }
0x117f   : > { %v3445_v42 = vpop.xlane.xlu1 %3444 }
0x1180   : > { %5165 = vrcp.f32 %v3445_v42 }
0x1183   : > { %v3798_v50 = vpop.trf.xlu0 }
0x1184   : > { %v5160_v51 = vpop.eup %5159  ;;  %v3830_v55 = vcombine.low %v3734_v41, %v3798_v50 }
0x1185   : > { %v3814_v56 = vpop.trf.xlu1  ;;  %v3450_v57 = vmul.f32 %v5160_v51, %v5152_v16 }
0x1186   : > { %v5162_v59 = vpop.eup %5161  ;;  %v3837_v60 = vrot.slane %v3830_v55, %v5399_v28  ;;  %v3855_v61 = vcombine.low %v3750_v43, %v3814_v56 }
0x1187   : > { %v3454_v63 = vpack.c.bf16 %v3450_v57, %v3450_v57  ;;  %v3451_v24 = vmul.f32 %v5162_v59, %v5154_v52 }
0x1188   : > { %v5164_v0 = vpop.eup %5163  ;;  %v3838_v20 = vcombine.low %v3829_v5, %v3837_v60  ;;  %v3862_v2 = vrot.slane %v3855_v61, %v5399_v28 }
0x1189   : > { %v3888_v62 = vsel %vm1051_vm3, %v3454_v63, 0  ;;  %v3455_v4 = vpack.c.bf16 %v3451_v24, %v3451_v24  ;;  %v3452_v3 = vmul.f32 %v5164_v0, %v5156_v22 }
0x118a   : > { %v5166_v7 = vpop.eup %5165  ;;  %v3845_v8 = vrot.slane %v3838_v20, %v5406_v40  ;;  %v3863_v13 = vcombine.low %v3854_v14, %v3862_v2  ;;  %4997 = vmatpush3.bf16.xpose.msra.mxu1 %v3888_v62 }
0x118b   : > { %v3934_v18 = vsel %vm1051_vm3, %v3455_v4, 0  ;;  %5008 = vmatprep.subr.bf16.mxu1 %v5241_v1  ;;  %v3453_v16 = vmul.f32 %v5166_v7, %v5158_v15  ;;  %v3456_v11 = vpack.c.bf16 %v3452_v3, %v3452_v3 }
0x118c   : > { %v3870_v52 = vrot.slane %v3863_v13, %v5406_v40  ;;  %5003 = vmatpush3.bf16.xpose.msra.mxu0 %v3934_v18  ;;  %v3875_v53 = vshrl.u32 %v3845_v8, 16  ;;  %v3846_v15 = vcombine.high %v3845_v8, %v5249_v36 }
0x118d   : > { %5014 = vmatprep.subr.bf16.mxu0 %v5241_v1  ;;  %v3457_v22 = vpack.c.bf16 %v3453_v16, %v3453_v16  ;;  %v3980_v32 = vsel %vm1051_vm3, %v3456_v11, 0 }
0x118e   : > { %v3874_v19 = vpack.i.b16 %v3870_v52, %v3845_v8  ;;  %v3876_v23 = vshrl.u32 %v3870_v52, 16  ;;  %v3871_v31 = vcombine.high %v3870_v52, %v5249_v36  ;;  %v3881_v35 = vshrl.u32 %v3846_v15, 16 }
0x118f   : > { %v4026_v33 = vsel %vm1051_vm3, %v3457_v22, 0 }
0x1190   : > { %v3877_v27 = vpack.i.b16 %v3876_v23, %v3875_v53  ;;  %v3882_v34 = vshrl.u32 %v3871_v31, 16  ;;  %v3880_v38 = vpack.i.b16 %v3871_v31, %v3846_v15 }
0x1191   : > { %4999 = vmatmul.mubr.msk.bf16.vlgmr.msra.gmra.mrb[36].mxu1 %vm1051_vm3, %v3874_v19 }
0x1192   : > { %5009 = vmatpush3.bf16.xpose.msra.mxu1 %v3980_v32  ;;  %5010 = vmatprep.mubr.msk.bf16.mxu1 %vm5242_vm0, %v5241_v1  ;;  %v3883_v26 = vpack.i.b16 %v3882_v34, %v3881_v35 }
0x1193   : > { %5005 = vmatmul.mubr.msk.bf16.vlgmr.msra.gmra.mrb[32].mxu0 %vm1051_vm3, %v3877_v27  ;;  %5020 = vmatprep.subr.bf16.mxu1 %v5241_v1 }
0x1194   : > { %5015 = vmatpush3.bf16.xpose.msra.mxu0 %v4026_v33  ;;  %5016 = vmatprep.mubr.msk.bf16.mxu0 %vm5242_vm0, %v5241_v1 }
0x1195   : > { %5028 = vmatprep.subr.bf16.mxu0 %v5241_v1 }
0x1199   : > { %5011 = vmatmul.mubr.msk.bf16.vlgmr.msra.gmra.mrb[40].mxu1 %vm1051_vm3, %v3880_v38 }
0x119a   : > { %5024 = vmatprep.mubr.msk.bf16.mxu1 %vm5242_vm0, %v5241_v1 }
0x119b   : > { %5017 = vmatmul.mubr.msk.bf16.vlgmr.msra.gmra.mrb[36].mxu0 %vm1051_vm3, %v3883_v26 }
0x119c   : > { %5032 = vmatprep.mubr.msk.bf16.mxu0 %vm5242_vm0, %v5241_v1 }
0x1264   : > { %v3924_v36 = vpop.f32.mrb[36].mxu1 }
0x1265   : > { %4068 = vxpose.xlu0.b32.start.end [1/1] (short) (narrow) %v3924_v36, 8  ;;  %v5000_v41 = vpop.f32.mrb[37].mxu1 }
0x1266   : > { %v3927_v43 = vpop.f32.mrb[38].mxu1  ;;  %v3970_v44 = vpop.f32.mrb[32].mxu0 }
0x1267   : > { %v5001_v6 = vpop.f32.mrb[39].mxu1  ;;  %4100 = vxpose.xlu1.b32.start.end [1/1] (short) (narrow) %v3970_v44, 8  ;;  %v5006_v10 = vpop.f32.mrb[33].mxu0 }
0x1268   : > { %v3973_v46 = vpop.f32.mrb[34].mxu0 }
0x1269   : > { %v5007_v49 = vpop.f32.mrb[35].mxu0 }
0x126c   : > { %v4016_v42 = vpop.f32.mrb[40].mxu1 }
0x126d   : > { %4132 = vxpose.xlu0.b32.start.end [1/1] (short) (narrow) %v4016_v42, 8  ;;  %v5012_v45 = vpop.f32.mrb[41].mxu1 }
0x126e   : > { %v4019_v50 = vpop.f32.mrb[42].mxu1  ;;  %v4062_v51 = vpop.f32.mrb[36].mxu0 }
0x126f   : > { %v5013_v54 = vpop.f32.mrb[43].mxu1  ;;  %v5018_v55 = vpop.f32.mrb[37].mxu0 }
0x1270   : > { %v4065_v56 = vpop.f32.mrb[38].mxu0 }
0x1271   : > { %4164 = vxpose.xlu0.b32.start.end [1/1] (short) (narrow) %v4062_v51, 8  ;;  %v5019_v57 = vpop.f32.mrb[39].mxu0 }
0x1285   : > { %4352 = vrot.lane.b32.xlu1 %v5666_v17, %s5251_s18 }
0x12e5   : > { %v4084_v59 = vpop.trf.xlu0 }
0x12e7   : > { %v4116_v60 = vpop.trf.xlu1 }
0x12ed   : > { %v4148_v5 = vpop.trf.xlu0 }
0x12ee   : > { %v4196_v61 = vcombine.low %v4084_v59, %v4148_v5  ;;  %v4197_v63 = vcombine.high %v4084_v59, %v4148_v5 }
0x12f0   : > { %v4204_v20 = vrot.slane %v4196_v61, %v5399_v28  ;;  %v4211_v2 = vrot.slane %v4197_v63, %v5399_v28 }
0x12f1   : > { %v4180_v24 = vpop.trf.xlu0 }
0x12f2   : > { %v4212_v0 = vcombine.low %v4116_v60, %v4180_v24  ;;  %v4213_v14 = vcombine.high %v4116_v60, %v4180_v24 }
0x12f4   : > { %v4220_v62 = vrot.slane %v4212_v0, %v5399_v28  ;;  %v4227_v4 = vrot.slane %v4213_v14, %v5399_v28 }
0x12f6   : > { %v4228_v3 = vcombine.low %v4204_v20, %v4220_v62  ;;  %v4229_v7 = vcombine.high %v4204_v20, %v4220_v62  ;;  %v4244_v8 = vcombine.low %v4211_v2, %v4227_v4  ;;  %v4245_v17 = vcombine.high %v4211_v2, %v4227_v4  ;;  %v5126_v2 = vld [vmem:[%s6028_s3 + $0x28] sm:$0xff]  }
0x12f7   : > { %v4353_v13 = vpop.permute.xlu1 %4352 }
0x12f8   : > { %v4236_v18 = vrot.slane %v4228_v3, %v5406_v40  ;;  %v4243_v16 = vrot.slane %v4229_v7, %v5406_v40  ;;  %v4252_v52 = vrot.slane %v4244_v8, %v5406_v40  ;;  %v4259_v11 = vrot.slane %v4245_v17, %v5406_v40  ;;  %5021 = vmatpush3.bf16.msra.mxu1 %v4353_v13  ;;  %v5176_v7 = vld [vmem:[%s6029_s4 + $0x8] sm:$0xff] }
0x12f9   : > { %5022 = vmatprep.subr.bf16.mxu1 %v5241_v1  ;;  %v4418_v8 = vrot.slane %v5176_v7, %v2251_v47  ;;  %v5128_v47 = vld [vmem:[%s6028_s3 + $0x38] sm:$0xff]  }
0x12fa   : > { %v4264_v53 = vcombine.low %v4236_v18, %v4243_v16  ;;  %v4791_v19 = vcombine.high %v4236_v18, %v4243_v16  ;;  %v4280_v23 = vcombine.low %v4252_v52, %v4259_v11  ;;  %v4792_v22 = vcombine.high %v4252_v52, %v4259_v11 }
0x12fb   : > { %v4423_v18 = vrot.slane %v5176_v7, %v2256_v48  ;;  %v4429_v48 = vrot.slane %v5176_v7, %v2262_v58 }
0x12fc   : > { %v4271_v27 = vrot.slane %v4264_v53, %v5399_v28  ;;  %v4279_v31 = vrot.slane %v4791_v19, %v5399_v28  ;;  %v4287_v32 = vrot.slane %v4280_v23, %v5399_v28  ;;  %v4295_v15 = vrot.slane %v4792_v22, %v5399_v28  ;;  %v5127_v53 = vld [vmem:[%s6028_s3 + $0x30] sm:$0xff]  }
0x12fe   : > { %v4297_v33 = vcombine.high %v4271_v27, %v4279_v31  ;;  %v4313_v34 = vcombine.high %v4287_v32, %v4295_v15  ;;  %v4296_v35 = vcombine.low %v4271_v27, %v4279_v31  ;;  %v4312_v38 = vcombine.low %v4287_v32, %v4295_v15 }
0x1300   : > { %v4311_v26 = vrot.slane %v4297_v33, %v5406_v40  ;;  %v4327_v36 = vrot.slane %v4313_v34, %v5406_v40  ;;  %v4304_v41 = vrot.slane %v4296_v35, %v5406_v40  ;;  %v4320_v43 = vrot.slane %v4312_v38, %v5406_v40 }
0x1301   : > { %v4495_v33 = vrot.slane %v5176_v7, %v2327_v12  ;;  %v4580_v12 = vrot.slane %v5176_v7, %v2413_v29  ;;  %v5129_v29 = vld [vmem:[%s6030_s5] sm:$0xff]  }
0x1302   : > { %v4330_v44 = vcombine.low %v4311_v26, %v4327_v36  ;;  %v4329_v6 = vcombine.high %v4304_v41, %v4320_v43  ;;  %v4328_v10 = vcombine.low %v4304_v41, %v4320_v43  ;;  %v4331_v28 = vcombine.high %v4311_v26, %v4327_v36 }
0x1304   : > { %4337 = vrot.lane.b32.xlu1 %v4330_v44, %s5252_s19  ;;  %4333 = vrot.lane.b32.xlu0 %v4329_v6, %s5253_s20  ;;  %s4814_s19 = sshll.u32 %s5312_s25, 4 }
0x1305   : > { %s5983_s14 = scalar_lea.hbm %s6031_s6, %s4814_s19 }
0x1308   : > { %4341 = vrot.lane.b32.xlu1 %v4331_v28, %s5254_s26 }
0x130c   : > { %4354 = vrot.lane.b32.xlu1 %v5672_v21, %s5251_s18  ;;  %v4351_v21 = vrot.slane %v5695_v39, %v2183_v25  ;;  %v5123_v25 = vld [vmem:[%s6027_s2 + $0x24] ss:$8 sps:$4 sm:$0xff]   ;;  %s240_s18 = sand.u32 1, %s5231_s22  }
0x130d   : > { %5029 = vmatpush3.bf16.msra.mxu0 %v5123_v25  ;;  %v5125_v39 = vld [vmem:[%s6028_s3 + $0x20] sm:$0xff]   ;;  %s241_s20 = scalar_lea.vmem [#allocation2], %s240_s18  ;;  %s4673_s25 = scalar_lea.sflag [#allocation3], %s240_s18 }
0x130e   : > { %5030 = vmatprep.subr.bf16.mxu0 %v5241_v1  ;;  %s4685_s26 = sshll.u32 %s241_s20, 4  ;;  %s5985_s26 = int_to_ptr.vmem [resolvable:$true] %s4685_s26 }
0x130f   : > { %s5177_s15 = scalar_lea.vmem %s5985_s26, 16  ;;  %p5184_p0 = scmp.lt.s32.totalorder %s5985_s26, %s5182_s17 }
0x1310   : > { %p5178_p11 = scmp.ne.s32.totalorder %s5985_s26, %s5177_s15  ;;  %p5185_p1 = scmp.lt.s32.totalorder %s5183_s28, %s5177_s15 }
0x1312   : > { %p5179_p12 = pnand %p5178_p11, %p5329_p5  ;;  %p5186_p2 = por %p5185_p1, %p5184_p0 }
0x1314   : > { %p5180_p13 = pneg %p5179_p12 }
0x1316   : > { %p5187_p3 = pnand %p5186_p2, %p5180_p13 }
0x1376   : > { %v4338_v46 = vpop.permute.xlu1 %4337  ;;  %v4334_v49 = vpop.permute.xlu0 %4333 }
0x1377   : > { %v4344_v42 = vsel %vm1051_vm3, %v4328_v10, %v4334_v49 }
0x1378   : > { %v4345_v40 = vsel %vm2176_vm4, %v4344_v42, %v4338_v46 }
0x137a   : > { %v4342_v45 = vpop.permute.xlu1 %4341 }
0x137b   : > { %v4346_v50 = vsel %vm2178_vm5, %v4345_v40, %v4342_v45 }
0x137c   : > { %v4347_v54 = vpack.c.bf16 %v4346_v50, %v4346_v50  ;;  %v4585_v50 = vrot.slane %v5176_v7, %v2418_v30 }
0x137e   : > { %v4355_v51 = vpop.permute.xlu1 %4354 }
0x137f   : > { %5023 = vmatpush3.bf16.msra.mxu1 %v4355_v51 }
0x1380   : > { %5036 = vmatprep.subr.bf16.mxu1 %v5241_v1 }
0x1382   : > { %5025 = vmatmul.mubr.msk.bf16.vlgmr.msra.gmra.mrb[44].mxu1 %vm273_vm1, %v4347_v54 }
0x1383   : > { %5044 = vmatprep.mubr.msk.bf16.mxu1 %vm5242_vm0, %v5241_v1  ;;  %5037 = vmatpush3.bf16.msra.mxu1 %v5125_v39 }
0x1384   : > { %5038 = vmatprep.subr.bf16.mxu1 %v5241_v1 }
0x1387   : > { %5039 = vmatpush3.bf16.msra.mxu1 %v5126_v2 }
0x1388   : > { %5040 = vmatprep.subr.bf16.mxu1 %v5241_v1 }
0x138b   : > { %5041 = vmatpush3.bf16.msra.mxu1 %v5127_v53 }
0x138c   : > { %5042 = vmatprep.subr.bf16.mxu1 %v5241_v1 }
0x138f   : > { %5043 = vmatpush3.bf16.msra.mxu1 %v5128_v47 }
0x1455   : > { %v4395_v55 = vpop.f32.mrb[44].mxu1 }
0x1456   : > { %v4396_v56 = vadd.f32 %v4395_v55, %v4351_v21  ;;  %v5026_v57 = vpop.f32.mrb[45].mxu1 }
0x1457   : > { %v4398_v59 = vpop.f32.mrb[46].mxu1 }
0x1458   : > { %v4401_v5 = vadd.f32 %v4396_v56, %v5685_v37  ;;  %v5027_v60 = vpop.f32.mrb[47].mxu1  ;;  %v5124_v37 = vld [vmem:[%s6027_s2 + $0x34] ss:$8 sps:$4 sm:$0xff]  }
0x1459   : > { %5031 = vmatpush3.bf16.msra.mxu0 %v5124_v37 }
0x145a   : > { %v4402_v61 = vsel %vm273_vm1, %v4401_v5, 0.0  ;;  %5048 = vmatprep.subr.bf16.mxu0 %v5241_v1 }
0x145b   : > { %4403 = vadd.xlane.f32.xlu0 %v4402_v61 }
0x14e8   : > { %v4404_v63 = vpop.xlane.xlu0 %4403 }
0x14e9   : > { %v4405_v24 = vmul.f32 0.03125, %v4404_v63  ;;  %v4810_v63 = vld [vmem:[%s6029_s4 + $0x10] sm:$0xff] }
0x14eb   : > { %v4406_v0 = vsub.f32 %v4401_v5, %v4405_v24 }
0x14ed   : > { %v4407_v14 = vmul.f32 %v4406_v0, %v4406_v0 }
0x14ef   : > { %v4408_v20 = vsel %vm273_vm1, %v4407_v14, 0.0  ;;  %v4605_v14 = vrot.slane %v4810_v63, 1 }
0x14f0   : > { %4409 = vadd.xlane.f32.xlu1 %v4408_v20 }
0x157d   : > { %v4410_v62 = vpop.xlane.xlu1 %4409 }
0x157e   : > { %v4411_v4 = vmul.f32 0.03125, %v4410_v62 }
0x1580   : > { %v4412_v3 = vadd.f32 1e-05, %v4411_v4 }
0x1582   : > { %5167 = vrsqrt.f32 %v4412_v3 }
0x158c   : > { %v5168_v17 = vpop.eup %5167 }
0x158d   : > { %v4414_v13 = vmul.f32 %v5168_v17, %v4406_v0 }
0x158f   : > { %v4419_v16 = vmul.f32 %v4418_v8, %v4414_v13 }
0x1591   : > { %v4424_v52 = vadd.f32 %v4423_v18, %v4419_v16 }
0x1593   : > { %v4425_v11 = vpack.c.bf16 %v4424_v52, %v4424_v52 }
0x1595   : > { %5033 = vmatmul.mubr.msk.bf16.vlgmr.msra.gmra.mrb[40].mxu0 %vm273_vm1, %v4425_v11 }
0x1596   : > { %5052 = vmatprep.mubr.msk.bf16.mxu0 %vm5242_vm0, %v5241_v1  ;;  %5049 = vmatpush3.bf16.msra.mxu0 %v5129_v29 }
0x1597   : > { %5050 = vmatprep.subr.bf16.mxu0 %v5241_v1  ;;  %v4625_v1 = vrot.slane %v4810_v63, 2 }
0x159a   : > { %5051 = vmatpush3.bf16.msra.mxu0 %v5130_v9 }
0x1668   : > { %v4475_v19 = vpop.f32.mrb[40].mxu0 }
0x1669   : > { %v4476_v23 = vadd.f32 %v4475_v19, %v4429_v48  ;;  %v5034_v22 = vpop.f32.mrb[41].mxu0 }
0x166a   : > { %v4478_v27 = vpop.f32.mrb[42].mxu0 }
0x166b   : > { %v4481_v31 = vmax.f32 %v4476_v23, 0.0  ;;  %v5035_v32 = vpop.f32.mrb[43].mxu0 }
0x166d   : > { %v4491_v15 = vpack.c.bf16 %v4481_v31, %v4481_v31 }
0x166f   : > { %5045 = vmatmul.mubr.msk.bf16.vlgmr.msra.gmra.mrb[48].mxu1 %vm2353_vm6, %v4491_v15 }
0x1742   : > { %v4557_v34 = vpop.f32.mrb[48].mxu1 }
0x1743   : > { %v4558_v35 = vadd.f32 %v4557_v34, %v4495_v33  ;;  %v5046_v38 = vpop.f32.mrb[49].mxu1 }
0x1744   : > { %v4560_v26 = vpop.f32.mrb[50].mxu1 }
0x1745   : > { %v4563_v36 = vadd.f32 %v4558_v35, %v4424_v52  ;;  %v5047_v41 = vpop.f32.mrb[51].mxu1 }
0x1747   : > { %v4564_v58 = vsel %vm273_vm1, %v4563_v36, 0.0 }
0x1748   : > { %4565 = vadd.xlane.f32.xlu0 %v4564_v58 }
0x17d5   : > { %v4566_v43 = vpop.xlane.xlu0 %4565 }
0x17d6   : > { %v4567_v44 = vmul.f32 0.03125, %v4566_v43 }
0x17d8   : > { %v4568_v6 = vsub.f32 %v4563_v36, %v4567_v44 }
0x17da   : > { %v4569_v10 = vmul.f32 %v4568_v6, %v4568_v6 }
0x17dc   : > { %v4570_v28 = vsel %vm273_vm1, %v4569_v10, 0.0 }
0x17dd   : > { %4571 = vadd.xlane.f32.xlu0 %v4570_v28 }
0x186a   : > { %v4572_v46 = vpop.xlane.xlu0 %4571 }
0x186b   : > { %v4573_v49 = vmul.f32 0.03125, %v4572_v46 }
0x186d   : > { %v4574_v42 = vadd.f32 1e-05, %v4573_v49 }
0x186f   : > { %5169 = vrsqrt.f32 %v4574_v42 }
0x1879   : > { %v5170_v45 = vpop.eup %5169 }
0x187a   : > { %v4576_v40 = vmul.f32 %v5170_v45, %v4568_v6 }
0x187c   : > { %v4581_v51 = vmul.f32 %v4580_v12, %v4576_v40 }
0x187e   : > { %v4586_v54 = vadd.f32 %v4585_v50, %v4581_v51 }
0x1880   : > { %v4590_v21 = vsel %vm4589_vm7, %v4586_v54, 0.0 }
0x1881   : > { %4591 = vadd.xlane.f32.xlu1 %v4590_v21 }
0x190e   : > { %v4592_v55 = vpop.xlane.xlu1 %4591 }
0x190f   : > { %v4593_v56 = vmul.f32 0.03125, %v4592_v55 }
0x1911   : > { %v4594_v57 = vsub.f32 %v4586_v54, %v4593_v56 }
0x1913   : > { %v4595_v59 = vmul.f32 %v4594_v57, %v4594_v57 }
0x1915   : > { %v4596_v5 = vsel %vm4589_vm7, %v4595_v59, 0.0 }
0x1916   : > { %4597 = vadd.xlane.f32.xlu0 %v4596_v5 }
0x19a3   : > { %v4598_v30 = vpop.xlane.xlu0 %4597 }
0x19a4   : > { %v4599_v60 = vmul.f32 0.03125, %v4598_v30 }
0x19a6   : > { %v4600_v61 = vadd.f32 1e-05, %v4599_v60 }
0x19a8   : > { %5171 = vrsqrt.f32 %v4600_v61 }
0x19b2   : > { %v5172_v24 = vpop.eup %5171 }
0x19b3   : > { %v4602_v0 = vmul.f32 %v5172_v24, %v4594_v57 }
0x19b5   : > { %v4603_v20 = vmul.f32 %v4810_v63, %v4602_v0 }
0x19b7   : > { %v4607_v25 = vadd.f32 %v4605_v14, %v4603_v20 }
0x19b9   : > { %v4612_v37 = vpack.c.bf16 %v4607_v25, %v4607_v25 }
0x19bb   : > { %5053 = vmatmul.mubr.msk.bf16.vlgmr.msra.gmra.mrb[44].mxu0 %vm273_vm1, %v4612_v37 }
0x1a8e   : > { %v4664_v39 = vpop.f32.mrb[44].mxu0 }
0x1a8f   : > { %v4665_v2 = vadd.f32 %v4664_v39, %v4625_v1  ;;  %v5054_v62 = vpop.f32.mrb[45].mxu0 }
0x1a90   : > { %v4667_v4 = vpop.f32.mrb[46].mxu0 }
0x1a91   : > { %v5055_v3 = vpop.f32.mrb[47].mxu0  ;;  %4671 = vst.msk [vmem:[%s241_s20] sm:$0x1] %vm4670_vm8, %v4665_v2 }
0x1a92   : > { %5190 = shalt.err (!%p5187_p3)
}
0x1a93   : > { %s5191_s29 = scalar_lea.hbm %s5983_s14, 16  ;;  %s5195_s11 = scalar_lea.hbm %s6031_s6, 32 }
0x1a94   : > { %p5192_p4 = scmp.ne.s32.totalorder %s5983_s14, %s5191_s29  ;;  %p5196_p9 = scmp.lt.u32.totalorder %s5983_s14, %s6031_s6 }
0x1a95   : > { %p5197_p10 = scmp.lt.u32.totalorder %s5195_s11, %s5191_s29  ;;  %p5199_p12 = scmp.lt.u32.totalorder %s5191_s29, %s5983_s14 }
0x1a96   : > { %p5193_p7 = pnand %p5192_p4, %p5329_p5 }
0x1a97   : > { %p5198_p11 = por %p5197_p10, %p5196_p9 }
0x1a98   : > { %p5194_p8 = pneg %p5193_p7 }
0x1a99   : > { %p5200_p13 = por %p5199_p12, %p5198_p11 }
0x1a9b   : > { %p5201_p0 = pnand %p5200_p13, %p5194_p8 }
0x1a9d   : > { %5204 = shalt.err (!%p5201_p0)
}
0x1a9e   : > { %5056 = dma.vmem_to_hbm [thread:$0]  (%p5329_p5), %s5985_s26, 16, %s5983_s14, %s4673_s25  }
0x1a9f PF: > { %p5062_p1 = scmp.ge.s32.totalorder %s5239_s24, 2  ;;  %s4697_s20 = sand.u32 1, %s5227_s21  }
0x1aa0   : > { %s4698_s12 = scalar_lea.sflag [#allocation3], %s4697_s20 }
0x1aa1   : > { %p5059_p2 = pnand %p5062_p1, %p5333_p6 }
0x1aa3   : > { %5222 = dma.done.wait (!%p5059_p2), %s4698_s12, 16  }
0x1aa4   : > { %5224 = vsyncadd (!%p5059_p2), %s4698_s12, 4294967280  ;;  %p16_p3 = scmp.ge.s32.totalorder %s5316_s27, 4   ;;  %s6034_s21 = smov %s5231_s22 }
0x1aa5   : > { %s6035_s22 = smov %s5235_s23  ;;  %s6036_s23 = smov %s5327_s30 }
0x1aa6   : > { %s6037_s24 = smov %s5316_s27  ;;  %18 = sbr.rel (!%p16_p3) target bundleno = 3 (0x3), region = 83 }
0x1aad   :  { %4702 = vsyncpa [#allocation3], 1 }
0x1aae   :  { %4704 = vsyncpa [#allocation3 + $0x1], 1 }

</bundles_post_ra>
